<compile_context>
chip_gen: v6e
topology: v6e:2x2x1
jax: 0.10.0
libtpu: 0.0.40
codegen_flags: <defaults>
</compile_context>

<pallas_src>
import jax
import jax.numpy as jnp
from jax.experimental import pallas as pl
from jax.experimental.pallas import tpu as pltpu

LN_EPS = 1e-5        # nn.LayerNorm default
LANE = 128           # TPU lane width
SUBLANE_BF16 = 16    # bf16 packs 16 rows per vreg


def _round_up(n, m):
    return ((n + m - 1) // m) * m


def _vmem_budget_bytes():
    """~80% of per-core VMEM (v5e/v6e ~102 MiB, v7x ~51 MiB); safe fallback."""
    try:
        cap = int(pltpu.get_tpu_info().vmem_capacity_bytes)
        return int(cap * 0.8)
    except Exception:
        return 48 * 1024 * 1024   # fits every TPU generation


def _pad_2d(a, rows, cols, dtype):
    a = a.astype(dtype)
    pr, pc = rows - a.shape[0], cols - a.shape[1]
    if pr == 0 and pc == 0:
        return a
    return jnp.pad(a, ((0, pr), (0, pc)))


def _pad_row(v, cols):
    v = v.astype(jnp.float32).reshape(1, -1)
    pc = cols - v.shape[1]
    if pc == 0:
        return v
    return jnp.pad(v, ((0, 0), (0, pc)))


def _make_mlp_kernel(n_hidden, hidden_true, hidden_pad, compute_dtype):
    """Fused MLP: n_hidden x (Linear -> ReLU -> LayerNorm), then last Linear."""

    def kernel(*refs):
        x_ref = refs[0]
        out_ref = refs[-1]
        p = refs[1:-1]   # (W, b, gamma, beta) per hidden layer, then (W_last, b_last)

        h = x_ref[...]                      # bf16, lane-padded
        idx = 0
        for li in range(n_hidden):
            w_ref, b_ref, g_ref, be_ref = p[idx:idx + 4]
            idx += 4
            # Linear on the MXU: bf16 x bf16 -> f32 accumulation.
            z = jnp.dot(h, w_ref[...], preferred_element_type=jnp.float32)
            z = z + b_ref[...]              # f32 bias
            # hidden_activation = relu
            z = jnp.maximum(z, 0.0)
            # LayerNorm over the *true* feature count.  Feature axis is zero
            # padded; padded lanes hold exact zeros, so the mean over all lanes
            # divided by the true count is exact.  Variance is the centered
            # two-pass form with padded lanes masked out (no cancellation).
            n_true = hidden_true[li]
            inv_n = 1.0 / float(n_true)
            mu = jnp.sum(z, axis=-1, keepdims=True) * inv_n
            zc = z - mu
            if hidden_pad[li] != n_true:
                lane = jax.lax.broadcasted_iota(jnp.int32, (1, hidden_pad[li]), 1)
                zc_sq = jnp.where(lane < n_true, zc, 0.0)
            else:
                zc_sq = zc
            var = jnp.sum(zc_sq * zc_sq, axis=-1, keepdims=True) * inv_n
            z = zc * jax.lax.rsqrt(var + LN_EPS)
            # gamma/beta are zero in padded lanes -> padded lanes return to 0.
            z = z * g_ref[...] + be_ref[...]
            h = z.astype(compute_dtype)

        # last_fc; output_activation = identity, out_layer_norm = False.
        w_ref, b_ref = p[idx], p[idx + 1]
        y = jnp.dot(h, w_ref[...], preferred_element_type=jnp.float32) + b_ref[...]
        out_ref[...] = y.astype(out_ref.dtype)

    return kernel


def mlp_pallas(x, params, output_size, *, tile_b=None, compute_dtype=jnp.bfloat16):
    """params = [(W, b, gamma, beta), ...hidden..., (W_last, b_last)], W is [in, out]."""
    B, F = x.shape
    n_hidden = len(params) - 1
    hidden_sizes = [w.shape[1] for (w, _b, _g, _be) in params[:-1]]

    # ---- lane-dense padding of every feature axis (exact, zero padding) ----
    F_pad = _round_up(F, LANE)
    hid_pad = [_round_up(h, LANE) for h in hidden_sizes]
    out_pad = _round_up(max(output_size, 1), LANE)
    in_dims = [F_pad] + hid_pad
    max_width = max([F_pad, out_pad] + hid_pad)

    comp_item = jnp.dtype(compute_dtype).itemsize
    out_item = jnp.dtype(x.dtype).itemsize

    # ---- pad + cast parameters once (jnp.pad; no-op when already aligned) ----
    flat_params = []
    for li, (w, b, g, be) in enumerate(params[:-1]):
        flat_params += [
            _pad_2d(w, in_dims[li], hid_pad[li], compute_dtype),
            _pad_row(b, hid_pad[li]),
            _pad_row(g, hid_pad[li]),
            _pad_row(be, hid_pad[li]),
        ]
    w_l, b_l = params[-1]
    flat_params += [_pad_2d(w_l, in_dims[-1], out_pad, compute_dtype),
                    _pad_row(b_l, out_pad)]

    weight_bytes = sum(int(a.size) * a.dtype.itemsize for a in flat_params)
    vmem_budget = _vmem_budget_bytes()
    kernel = _make_mlp_kernel(n_hidden, hidden_sizes, hid_pad, compute_dtype)
    use_buffered = hasattr(pl, "Buffered")

    def pick_tile(resident_weight_bytes):
        # Largest 16-aligned batch tile whose resident weights + double-buffered
        # x/out tiles + ~5 live f32 activation temporaries fit the budget.
        def fits(tb):
            io = 2 * tb * (F_pad * comp_item + out_pad * out_item)
            act = 5 * tb * max_width * 4
            return resident_weight_bytes + io + act <= vmem_budget

        cap_b = max(SUBLANE_BF16, _round_up(B, SUBLANE_BF16))
        tb = SUBLANE_BF16
        for cand in (1024, 768, 512, 384, 256, 192, 128, 96, 64, 48, 32, 16):
            if cand <= cap_b and fits(cand):
                tb = cand
                break
        # Guarantee >=2 grid steps so the batch axis can shard across v7x's two
        # TensorCores (perf-neutral on single-core v5e/v6e).
        if B >= 2 * SUBLANE_BF16 and _round_up(B, tb) // tb < 2:
            tb = max(SUBLANE_BF16, _round_up(pl.cdiv(B, 2), SUBLANE_BF16))
        return tb

    def run(single_buffer):
        resident = weight_bytes if single_buffer else 2 * weight_bytes
        if tile_b is not None:
            tb = max(SUBLANE_BF16, _round_up(tile_b, SUBLANE_BF16))
        else:
            tb = pick_tile(resident)
        B_pad = _round_up(B, tb)
        x_p = _pad_2d(x, B_pad, F_pad, compute_dtype)

        # Advisory cost estimate for XLA scheduling around the custom call.
        flops, prev = 0, F_pad
        for hp in hid_pad + [out_pad]:
            flops += 2 * B_pad * prev * hp
            prev = hp
        bytes_accessed = (int(x_p.size) * comp_item + B_pad * out_pad * out_item
                          + weight_bytes)
        cost = pl.CostEstimate(flops=int(flops),
                               transcendentals=int(n_hidden * B_pad),
                               bytes_accessed=int(bytes_accessed))

        def const_spec(shape):
            idx_map = lambda i: tuple(0 for _ in shape)
            if single_buffer:
                return pl.BlockSpec(shape, idx_map, pipeline_mode=pl.Buffered(1))
            return pl.BlockSpec(shape, idx_map)

        in_specs = [pl.BlockSpec((tb, F_pad), lambda i: (i, 0))]
        in_specs += [const_spec(tuple(a.shape)) for a in flat_params]

        return pl.pallas_call(
            kernel,
            out_shape=jax.ShapeDtypeStruct((B_pad, out_pad), x.dtype),
            grid_spec=pltpu.PrefetchScalarGridSpec(
                num_scalar_prefetch=0,
                grid=(B_pad // tb,),
                in_specs=in_specs,
                out_specs=pl.BlockSpec((tb, out_pad), lambda i: (i, 0)),
            ),
            compiler_params=pltpu.CompilerParams(
                dimension_semantics=("parallel",),
                vmem_limit_bytes=int(vmem_budget)),
            cost_estimate=cost,
        )(x_p, *flat_params)

    if use_buffered:
        # hasattr cannot detect a jax version that rejects buffer_count=1, so a
        # narrow safety net remains.  This call is *eager* (not under jit), so a
        # lowering/compile rejection of Buffered(1) surfaces right here; the
        # fallback recomputes tile_b/budget consistently for double-buffered
        # weights instead of reusing the single-buffered configuration.
        try:
            y_pad = run(True)
        except Exception:
            y_pad = run(False)
    else:
        y_pad = run(False)

    return y_pad[:B, :output_size]


def mlp_reference(x, params, compute_dtype=jnp.bfloat16):
    """Pure-JAX reference mirroring the kernel's compute precision (bf16 matmul
    inputs, f32 accumulation / bias / LayerNorm, centered variance)."""
    h = x.astype(compute_dtype)
    for (w, b, g, be) in params[:-1]:
        z = jnp.dot(h, w.astype(compute_dtype), preferred_element_type=jnp.float32) + b
        z = jnp.maximum(z, 0.0)
        mu = jnp.mean(z, axis=-1, keepdims=True)
        var = jnp.mean(jnp.square(z - mu), axis=-1, keepdims=True)
        z = (z - mu) * jax.lax.rsqrt(var + LN_EPS)
        z = z * g + be
        h = z.astype(compute_dtype)
    w, b = params[-1]
    y = jnp.dot(h, w.astype(compute_dtype), preferred_element_type=jnp.float32) + b
    return y.astype(x.dtype)


def mlp_reference_f32(x, params):
    """Pure f32 reference matching the PyTorch module forward (defaults)."""
    h = x.astype(jnp.float32)
    for (w, b, g, be) in params[:-1]:
        h = h @ w + b
        h = jnp.maximum(h, 0.0)
        mu = jnp.mean(h, axis=-1, keepdims=True)
        var = jnp.mean(jnp.square(h - mu), axis=-1, keepdims=True)
        h = (h - mu) * jax.lax.rsqrt(var + LN_EPS)
        h = h * g + be
    w, b = params[-1]
    return (h @ w + b).astype(x.dtype)


def init_mlp_params(key, input_size, hidden_sizes, output_size):
    """Deterministic synthetic init (ptu.m_init checkpoint not loaded)."""
    params = []
    in_size = input_size
    for h in hidden_sizes:
        key, kw, kb = jax.random.split(key, 3)
        w = jax.random.normal(kw, (in_size, h), jnp.float32) * (1.0 / jnp.sqrt(in_size))
        b = jax.random.normal(kb, (h,), jnp.float32) * 0.01
        gamma = jnp.ones((h,), jnp.float32)
        beta = jnp.zeros((h,), jnp.float32)
        params.append((w, b, gamma, beta))
        in_size = h
    key, kw, kb = jax.random.split(key, 3)
    w = jax.random.normal(kw, (in_size, output_size), jnp.float32) * (1.0 / jnp.sqrt(in_size))
    b = jax.random.normal(kb, (output_size,), jnp.float32) * 0.01
    params.append((w, b))
    return params


if __name__ == "__main__":
    key = jax.random.PRNGKey(0)
    batch = 64
    input_size = 16
    hidden_sizes = [32, 48]
    output_size = 8

    kx, kp = jax.random.split(key)
    x = jax.random.normal(kx, (batch, input_size), jnp.float32)
    params = init_mlp_params(kp, input_size, hidden_sizes, output_size)

    # Auto-tiled (>=2 grid steps for the v7x megacore path).
    y = jax.block_until_ready(mlp_pallas(x, params, output_size))
    # Also exercise a multi-step batch grid explicitly.
    y_tiled = jax.block_until_ready(mlp_pallas(x, params, output_size, tile_b=16))

    y_ref = mlp_reference(x, params)        # matches kernel precision
    y_ref32 = mlp_reference_f32(x, params)  # original module (f32) semantics

    assert y.shape == (batch, output_size)
    assert y_tiled.shape == (batch, output_size)
    assert jnp.allclose(y, y_ref, atol=1e-2, rtol=1e-2), "mismatch vs bf16-matched reference"
    assert jnp.allclose(y_tiled, y_ref, atol=1e-2, rtol=1e-2), "tiled mismatch vs reference"
    # bf16 compute is an approximation of the f32 module; loose sanity check only.
    assert jnp.allclose(y, y_ref32, atol=2e-1, rtol=2e-1), "drift vs f32 reference too large"

    print("KERNEL_OK")
</pallas_src>

<mosaic_0001>
module attributes {stable_mosaic.version = 11 : i64} {
  func.func @kernel(%arg0: i32, %arg1: memref<32x128xbf16, #tpu.memory_space<vmem>>, %arg2: memref<128x128xbf16, #tpu.memory_space<vmem>>, %arg3: memref<1x128xf32, #tpu.memory_space<vmem>>, %arg4: memref<1x128xf32, #tpu.memory_space<vmem>>, %arg5: memref<1x128xf32, #tpu.memory_space<vmem>>, %arg6: memref<128x128xbf16, #tpu.memory_space<vmem>>, %arg7: memref<1x128xf32, #tpu.memory_space<vmem>>, %arg8: memref<1x128xf32, #tpu.memory_space<vmem>>, %arg9: memref<1x128xf32, #tpu.memory_space<vmem>>, %arg10: memref<128x128xbf16, #tpu.memory_space<vmem>>, %arg11: memref<1x128xf32, #tpu.memory_space<vmem>>, %arg12: memref<32x128xf32, #tpu.memory_space<vmem>>) attributes {dimension_semantics = [#tpu.dimension_semantics<parallel>], iteration_bounds = array<i64: 2>, scalar_prefetch = 0 : i64, scratch_operands = 0 : i64, tpu.core_type = #tpu.core_type<tc>, window_params = [{transform_indices = @transform_0, window_bounds = array<i64: 32, 128>}, {pipeline_mode = #tpu.pipeline_mode<synchronous>, transform_indices = @transform_1, window_bounds = array<i64: 128, 128>}, {pipeline_mode = #tpu.pipeline_mode<synchronous>, transform_indices = @transform_2, window_bounds = array<i64: 1, 128>}, {pipeline_mode = #tpu.pipeline_mode<synchronous>, transform_indices = @transform_3, window_bounds = array<i64: 1, 128>}, {pipeline_mode = #tpu.pipeline_mode<synchronous>, transform_indices = @transform_4, window_bounds = array<i64: 1, 128>}, {pipeline_mode = #tpu.pipeline_mode<synchronous>, transform_indices = @transform_5, window_bounds = array<i64: 128, 128>}, {pipeline_mode = #tpu.pipeline_mode<synchronous>, transform_indices = @transform_6, window_bounds = array<i64: 1, 128>}, {pipeline_mode = #tpu.pipeline_mode<synchronous>, transform_indices = @transform_7, window_bounds = array<i64: 1, 128>}, {pipeline_mode = #tpu.pipeline_mode<synchronous>, transform_indices = @transform_8, window_bounds = array<i64: 1, 128>}, {pipeline_mode = #tpu.pipeline_mode<synchronous>, transform_indices = @transform_9, window_bounds = array<i64: 128, 128>}, {pipeline_mode = #tpu.pipeline_mode<synchronous>, transform_indices = @transform_10, window_bounds = array<i64: 1, 128>}, {transform_indices = @transform_11, window_bounds = array<i64: 32, 128>}]} {
    %c0 = arith.constant 0 : index
    %c0_0 = arith.constant 0 : index
    %0 = vector.load %arg1[%c0, %c0_0] : memref<32x128xbf16, #tpu.memory_space<vmem>>, vector<32x128xbf16>
    %c0_1 = arith.constant 0 : index
    %c0_2 = arith.constant 0 : index
    %1 = vector.load %arg2[%c0_1, %c0_2] : memref<128x128xbf16, #tpu.memory_space<vmem>>, vector<128x128xbf16>
    %cst = arith.constant dense<0.000000e+00> : vector<32x128xf32>
    %2 = tpu.matmul %0, %1, %cst {dimension_numbers = #tpu.dot_dimension_numbers<[1], [0], [0], [1], [0, 0, 1, 1], [], []>} : vector<32x128xbf16>, vector<128x128xbf16>, vector<32x128xf32> -> vector<32x128xf32>
    %c0_3 = arith.constant 0 : index
    %c0_4 = arith.constant 0 : index
    %3 = vector.load %arg3[%c0_3, %c0_4] : memref<1x128xf32, #tpu.memory_space<vmem>>, vector<1x128xf32>
    %4 = vector.broadcast %3 : vector<1x128xf32> to vector<32x128xf32>
    %5 = arith.addf %2, %4 : vector<32x128xf32>
    %cst_5 = arith.constant 0.000000e+00 : f32
    %6 = vector.broadcast %cst_5 : f32 to vector<32x128xf32>
    %7 = arith.maximumf %5, %6 : vector<32x128xf32>
    %cst_6 = arith.constant dense<0.000000e+00> : vector<32xf32>
    %8 = vector.multi_reduction <add>, %7, %cst_6 [1] : vector<32x128xf32> to vector<32xf32>
    %9 = vector.shape_cast %8 : vector<32xf32> to vector<32x1xf32>
    %cst_7 = arith.constant 3.125000e-02 : f32
    %10 = vector.broadcast %cst_7 : f32 to vector<32x1xf32>
    %11 = arith.mulf %9, %10 : vector<32x1xf32>
    %12 = vector.broadcast %11 : vector<32x1xf32> to vector<32x128xf32>
    %13 = arith.subf %7, %12 : vector<32x128xf32>
    %14 = tpu.iota {dimensions = array<i32: 1>} : vector<1x128xi32>
    %c32_i32 = arith.constant 32 : i32
    %15 = vector.broadcast %c32_i32 : i32 to vector<1x128xi32>
    %16 = arith.cmpi slt, %14, %15 : vector<1x128xi32>
    %cst_8 = arith.constant 0.000000e+00 : f32
    %17 = vector.shape_cast %16 : vector<1x128xi1> to vector<1x128xi1>
    %18 = vector.broadcast %17 : vector<1x128xi1> to vector<32x128xi1>
    %19 = vector.broadcast %cst_8 : f32 to vector<32x128xf32>
    %20 = arith.select %18, %13, %19 : vector<32x128xi1>, vector<32x128xf32>
    %21 = arith.mulf %20, %20 : vector<32x128xf32>
    %cst_9 = arith.constant dense<0.000000e+00> : vector<32xf32>
    %22 = vector.multi_reduction <add>, %21, %cst_9 [1] : vector<32x128xf32> to vector<32xf32>
    %23 = vector.shape_cast %22 : vector<32xf32> to vector<32x1xf32>
    %cst_10 = arith.constant 3.125000e-02 : f32
    %24 = vector.broadcast %cst_10 : f32 to vector<32x1xf32>
    %25 = arith.mulf %23, %24 : vector<32x1xf32>
    %cst_11 = arith.constant 9.99999974E-6 : f32
    %26 = vector.broadcast %cst_11 : f32 to vector<32x1xf32>
    %27 = arith.addf %25, %26 : vector<32x1xf32>
    %28 = math.rsqrt %27 : vector<32x1xf32>
    %29 = vector.broadcast %28 : vector<32x1xf32> to vector<32x128xf32>
    %30 = arith.mulf %13, %29 : vector<32x128xf32>
    %c0_12 = arith.constant 0 : index
    %c0_13 = arith.constant 0 : index
    %31 = vector.load %arg4[%c0_12, %c0_13] : memref<1x128xf32, #tpu.memory_space<vmem>>, vector<1x128xf32>
    %32 = vector.broadcast %31 : vector<1x128xf32> to vector<32x128xf32>
    %33 = arith.mulf %30, %32 : vector<32x128xf32>
    %c0_14 = arith.constant 0 : index
    %c0_15 = arith.constant 0 : index
    %34 = vector.load %arg5[%c0_14, %c0_15] : memref<1x128xf32, #tpu.memory_space<vmem>>, vector<1x128xf32>
    %35 = vector.broadcast %34 : vector<1x128xf32> to vector<32x128xf32>
    %36 = arith.addf %33, %35 : vector<32x128xf32>
    %37 = arith.truncf %36 : vector<32x128xf32> to vector<32x128xbf16>
    %c0_16 = arith.constant 0 : index
    %c0_17 = arith.constant 0 : index
    %38 = vector.load %arg6[%c0_16, %c0_17] : memref<128x128xbf16, #tpu.memory_space<vmem>>, vector<128x128xbf16>
    %cst_18 = arith.constant dense<0.000000e+00> : vector<32x128xf32>
    %39 = tpu.matmul %37, %38, %cst_18 {dimension_numbers = #tpu.dot_dimension_numbers<[1], [0], [0], [1], [0, 0, 1, 1], [], []>} : vector<32x128xbf16>, vector<128x128xbf16>, vector<32x128xf32> -> vector<32x128xf32>
    %c0_19 = arith.constant 0 : index
    %c0_20 = arith.constant 0 : index
    %40 = vector.load %arg7[%c0_19, %c0_20] : memref<1x128xf32, #tpu.memory_space<vmem>>, vector<1x128xf32>
    %41 = vector.broadcast %40 : vector<1x128xf32> to vector<32x128xf32>
    %42 = arith.addf %39, %41 : vector<32x128xf32>
    %cst_21 = arith.constant 0.000000e+00 : f32
    %43 = vector.broadcast %cst_21 : f32 to vector<32x128xf32>
    %44 = arith.maximumf %42, %43 : vector<32x128xf32>
    %cst_22 = arith.constant dense<0.000000e+00> : vector<32xf32>
    %45 = vector.multi_reduction <add>, %44, %cst_22 [1] : vector<32x128xf32> to vector<32xf32>
    %46 = vector.shape_cast %45 : vector<32xf32> to vector<32x1xf32>
    %cst_23 = arith.constant 0.020833334 : f32
    %47 = vector.broadcast %cst_23 : f32 to vector<32x1xf32>
    %48 = arith.mulf %46, %47 : vector<32x1xf32>
    %49 = vector.broadcast %48 : vector<32x1xf32> to vector<32x128xf32>
    %50 = arith.subf %44, %49 : vector<32x128xf32>
    %51 = tpu.iota {dimensions = array<i32: 1>} : vector<1x128xi32>
    %c48_i32 = arith.constant 48 : i32
    %52 = vector.broadcast %c48_i32 : i32 to vector<1x128xi32>
    %53 = arith.cmpi slt, %51, %52 : vector<1x128xi32>
    %cst_24 = arith.constant 0.000000e+00 : f32
    %54 = vector.shape_cast %53 : vector<1x128xi1> to vector<1x128xi1>
    %55 = vector.broadcast %54 : vector<1x128xi1> to vector<32x128xi1>
    %56 = vector.broadcast %cst_24 : f32 to vector<32x128xf32>
    %57 = arith.select %55, %50, %56 : vector<32x128xi1>, vector<32x128xf32>
    %58 = arith.mulf %57, %57 : vector<32x128xf32>
    %cst_25 = arith.constant dense<0.000000e+00> : vector<32xf32>
    %59 = vector.multi_reduction <add>, %58, %cst_25 [1] : vector<32x128xf32> to vector<32xf32>
    %60 = vector.shape_cast %59 : vector<32xf32> to vector<32x1xf32>
    %cst_26 = arith.constant 0.020833334 : f32
    %61 = vector.broadcast %cst_26 : f32 to vector<32x1xf32>
    %62 = arith.mulf %60, %61 : vector<32x1xf32>
    %cst_27 = arith.constant 9.99999974E-6 : f32
    %63 = vector.broadcast %cst_27 : f32 to vector<32x1xf32>
    %64 = arith.addf %62, %63 : vector<32x1xf32>
    %65 = math.rsqrt %64 : vector<32x1xf32>
    %66 = vector.broadcast %65 : vector<32x1xf32> to vector<32x128xf32>
    %67 = arith.mulf %50, %66 : vector<32x128xf32>
    %c0_28 = arith.constant 0 : index
    %c0_29 = arith.constant 0 : index
    %68 = vector.load %arg8[%c0_28, %c0_29] : memref<1x128xf32, #tpu.memory_space<vmem>>, vector<1x128xf32>
    %69 = vector.broadcast %68 : vector<1x128xf32> to vector<32x128xf32>
    %70 = arith.mulf %67, %69 : vector<32x128xf32>
    %c0_30 = arith.constant 0 : index
    %c0_31 = arith.constant 0 : index
    %71 = vector.load %arg9[%c0_30, %c0_31] : memref<1x128xf32, #tpu.memory_space<vmem>>, vector<1x128xf32>
    %72 = vector.broadcast %71 : vector<1x128xf32> to vector<32x128xf32>
    %73 = arith.addf %70, %72 : vector<32x128xf32>
    %74 = arith.truncf %73 : vector<32x128xf32> to vector<32x128xbf16>
    %c0_32 = arith.constant 0 : index
    %c0_33 = arith.constant 0 : index
    %75 = vector.load %arg10[%c0_32, %c0_33] : memref<128x128xbf16, #tpu.memory_space<vmem>>, vector<128x128xbf16>
    %cst_34 = arith.constant dense<0.000000e+00> : vector<32x128xf32>
    %76 = tpu.matmul %74, %75, %cst_34 {dimension_numbers = #tpu.dot_dimension_numbers<[1], [0], [0], [1], [0, 0, 1, 1], [], []>} : vector<32x128xbf16>, vector<128x128xbf16>, vector<32x128xf32> -> vector<32x128xf32>
    %c0_35 = arith.constant 0 : index
    %c0_36 = arith.constant 0 : index
    %77 = vector.load %arg11[%c0_35, %c0_36] : memref<1x128xf32, #tpu.memory_space<vmem>>, vector<1x128xf32>
    %78 = vector.broadcast %77 : vector<1x128xf32> to vector<32x128xf32>
    %79 = arith.addf %76, %78 : vector<32x128xf32>
    %c0_37 = arith.constant 0 : index
    %c0_38 = arith.constant 0 : index
    %80 = vector.load %arg12[%c0_37, %c0_38] : memref<32x128xf32, #tpu.memory_space<vmem>>, vector<32x128xf32>
    tpu.vector_store %arg12[%c0_37, %c0_38], %79 {strides = array<i32>} : memref<32x128xf32, #tpu.memory_space<vmem>>, vector<32x128xf32>,
    return
  }
  func.func @transform_0(%arg0: i32) -> (i32, i32) {
    %c0_i32 = arith.constant 0 : i32
    %c0_i32_0 = arith.constant 0 : i32
    return %arg0, %c0_i32 : i32, i32
  }
  func.func @transform_1(%arg0: i32) -> (i32, i32) {
    %c0_i32 = arith.constant 0 : i32
    %c0_i32_0 = arith.constant 0 : i32
    %c0_i32_1 = arith.constant 0 : i32
    return %c0_i32, %c0_i32_0 : i32, i32
  }
  func.func @transform_2(%arg0: i32) -> (i32, i32) {
    %c0_i32 = arith.constant 0 : i32
    %c0_i32_0 = arith.constant 0 : i32
    %c0_i32_1 = arith.constant 0 : i32
    return %c0_i32, %c0_i32_0 : i32, i32
  }
  func.func @transform_3(%arg0: i32) -> (i32, i32) {
    %c0_i32 = arith.constant 0 : i32
    %c0_i32_0 = arith.constant 0 : i32
    %c0_i32_1 = arith.constant 0 : i32
    return %c0_i32, %c0_i32_0 : i32, i32
  }
  func.func @transform_4(%arg0: i32) -> (i32, i32) {
    %c0_i32 = arith.constant 0 : i32
    %c0_i32_0 = arith.constant 0 : i32
    %c0_i32_1 = arith.constant 0 : i32
    return %c0_i32, %c0_i32_0 : i32, i32
  }
  func.func @transform_5(%arg0: i32) -> (i32, i32) {
    %c0_i32 = arith.constant 0 : i32
    %c0_i32_0 = arith.constant 0 : i32
    %c0_i32_1 = arith.constant 0 : i32
    return %c0_i32, %c0_i32_0 : i32, i32
  }
  func.func @transform_6(%arg0: i32) -> (i32, i32) {
    %c0_i32 = arith.constant 0 : i32
    %c0_i32_0 = arith.constant 0 : i32
    %c0_i32_1 = arith.constant 0 : i32
    return %c0_i32, %c0_i32_0 : i32, i32
  }
  func.func @transform_7(%arg0: i32) -> (i32, i32) {
    %c0_i32 = arith.constant 0 : i32
    %c0_i32_0 = arith.constant 0 : i32
    %c0_i32_1 = arith.constant 0 : i32
    return %c0_i32, %c0_i32_0 : i32, i32
  }
  func.func @transform_8(%arg0: i32) -> (i32, i32) {
    %c0_i32 = arith.constant 0 : i32
    %c0_i32_0 = arith.constant 0 : i32
    %c0_i32_1 = arith.constant 0 : i32
    return %c0_i32, %c0_i32_0 : i32, i32
  }
  func.func @transform_9(%arg0: i32) -> (i32, i32) {
    %c0_i32 = arith.constant 0 : i32
    %c0_i32_0 = arith.constant 0 : i32
    %c0_i32_1 = arith.constant 0 : i32
    return %c0_i32, %c0_i32_0 : i32, i32
  }
  func.func @transform_10(%arg0: i32) -> (i32, i32) {
    %c0_i32 = arith.constant 0 : i32
    %c0_i32_0 = arith.constant 0 : i32
    %c0_i32_1 = arith.constant 0 : i32
    return %c0_i32, %c0_i32_0 : i32, i32
  }
  func.func @transform_11(%arg0: i32) -> (i32, i32) {
    %c0_i32 = arith.constant 0 : i32
    %c0_i32_0 = arith.constant 0 : i32
    return %arg0, %c0_i32 : i32, i32
  }
}

module attributes {stable_mosaic.version = 11 : i64} {
  func.func @kernel(%arg0: i32, %arg1: memref<32x128xbf16, #tpu.memory_space<vmem>>, %arg2: memref<128x128xbf16, #tpu.memory_space<vmem>>, %arg3: memref<1x128xf32, #tpu.memory_space<vmem>>, %arg4: memref<1x128xf32, #tpu.memory_space<vmem>>, %arg5: memref<1x128xf32, #tpu.memory_space<vmem>>, %arg6: memref<128x128xbf16, #tpu.memory_space<vmem>>, %arg7: memref<1x128xf32, #tpu.memory_space<vmem>>, %arg8: memref<1x128xf32, #tpu.memory_space<vmem>>, %arg9: memref<1x128xf32, #tpu.memory_space<vmem>>, %arg10: memref<128x128xbf16, #tpu.memory_space<vmem>>, %arg11: memref<1x128xf32, #tpu.memory_space<vmem>>, %arg12: memref<32x128xf32, #tpu.memory_space<vmem>>) attributes {dimension_semantics = [#tpu.dimension_semantics<parallel>], iteration_bounds = array<i64: 2>, scalar_prefetch = 0 : i64, scratch_operands = 0 : i64, tpu.core_type = #tpu.core_type<tc>, window_params = [{transform_indices = @transform_0, window_bounds = array<i64: 32, 128>}, {pipeline_mode = #tpu.pipeline_mode<synchronous>, transform_indices = @transform_1, window_bounds = array<i64: 128, 128>}, {pipeline_mode = #tpu.pipeline_mode<synchronous>, transform_indices = @transform_2, window_bounds = array<i64: 1, 128>}, {pipeline_mode = #tpu.pipeline_mode<synchronous>, transform_indices = @transform_3, window_bounds = array<i64: 1, 128>}, {pipeline_mode = #tpu.pipeline_mode<synchronous>, transform_indices = @transform_4, window_bounds = array<i64: 1, 128>}, {pipeline_mode = #tpu.pipeline_mode<synchronous>, transform_indices = @transform_5, window_bounds = array<i64: 128, 128>}, {pipeline_mode = #tpu.pipeline_mode<synchronous>, transform_indices = @transform_6, window_bounds = array<i64: 1, 128>}, {pipeline_mode = #tpu.pipeline_mode<synchronous>, transform_indices = @transform_7, window_bounds = array<i64: 1, 128>}, {pipeline_mode = #tpu.pipeline_mode<synchronous>, transform_indices = @transform_8, window_bounds = array<i64: 1, 128>}, {pipeline_mode = #tpu.pipeline_mode<synchronous>, transform_indices = @transform_9, window_bounds = array<i64: 128, 128>}, {pipeline_mode = #tpu.pipeline_mode<synchronous>, transform_indices = @transform_10, window_bounds = array<i64: 1, 128>}, {transform_indices = @transform_11, window_bounds = array<i64: 32, 128>}]} {
    %c0 = arith.constant 0 : index
    %c0_0 = arith.constant 0 : index
    %0 = vector.load %arg1[%c0, %c0_0] : memref<32x128xbf16, #tpu.memory_space<vmem>>, vector<32x128xbf16>
    %c0_1 = arith.constant 0 : index
    %c0_2 = arith.constant 0 : index
    %1 = vector.load %arg2[%c0_1, %c0_2] : memref<128x128xbf16, #tpu.memory_space<vmem>>, vector<128x128xbf16>
    %cst = arith.constant dense<0.000000e+00> : vector<32x128xf32>
    %2 = tpu.matmul %0, %1, %cst {dimension_numbers = #tpu.dot_dimension_numbers<[1], [0], [0], [1], [0, 0, 1, 1], [], []>} : vector<32x128xbf16>, vector<128x128xbf16>, vector<32x128xf32> -> vector<32x128xf32>
    %c0_3 = arith.constant 0 : index
    %c0_4 = arith.constant 0 : index
    %3 = vector.load %arg3[%c0_3, %c0_4] : memref<1x128xf32, #tpu.memory_space<vmem>>, vector<1x128xf32>
    %4 = vector.broadcast %3 : vector<1x128xf32> to vector<32x128xf32>
    %5 = arith.addf %2, %4 : vector<32x128xf32>
    %cst_5 = arith.constant 0.000000e+00 : f32
    %6 = vector.broadcast %cst_5 : f32 to vector<32x128xf32>
    %7 = arith.maximumf %5, %6 : vector<32x128xf32>
    %cst_6 = arith.constant dense<0.000000e+00> : vector<32xf32>
    %8 = vector.multi_reduction <add>, %7, %cst_6 [1] : vector<32x128xf32> to vector<32xf32>
    %9 = vector.shape_cast %8 : vector<32xf32> to vector<32x1xf32>
    %cst_7 = arith.constant 3.125000e-02 : f32
    %10 = vector.broadcast %cst_7 : f32 to vector<32x1xf32>
    %11 = arith.mulf %9, %10 : vector<32x1xf32>
    %12 = vector.broadcast %11 : vector<32x1xf32> to vector<32x128xf32>
    %13 = arith.subf %7, %12 : vector<32x128xf32>
    %14 = tpu.iota {dimensions = array<i32: 1>} : vector<1x128xi32>
    %c32_i32 = arith.constant 32 : i32
    %15 = vector.broadcast %c32_i32 : i32 to vector<1x128xi32>
    %16 = arith.cmpi slt, %14, %15 : vector<1x128xi32>
    %cst_8 = arith.constant 0.000000e+00 : f32
    %17 = vector.shape_cast %16 : vector<1x128xi1> to vector<1x128xi1>
    %18 = vector.broadcast %17 : vector<1x128xi1> to vector<32x128xi1>
    %19 = vector.broadcast %cst_8 : f32 to vector<32x128xf32>
    %20 = arith.select %18, %13, %19 : vector<32x128xi1>, vector<32x128xf32>
    %21 = arith.mulf %20, %20 : vector<32x128xf32>
    %cst_9 = arith.constant dense<0.000000e+00> : vector<32xf32>
    %22 = vector.multi_reduction <add>, %21, %cst_9 [1] : vector<32x128xf32> to vector<32xf32>
    %23 = vector.shape_cast %22 : vector<32xf32> to vector<32x1xf32>
    %cst_10 = arith.constant 3.125000e-02 : f32
    %24 = vector.broadcast %cst_10 : f32 to vector<32x1xf32>
    %25 = arith.mulf %23, %24 : vector<32x1xf32>
    %cst_11 = arith.constant 9.99999974E-6 : f32
    %26 = vector.broadcast %cst_11 : f32 to vector<32x1xf32>
    %27 = arith.addf %25, %26 : vector<32x1xf32>
    %28 = math.rsqrt %27 : vector<32x1xf32>
    %29 = vector.broadcast %28 : vector<32x1xf32> to vector<32x128xf32>
    %30 = arith.mulf %13, %29 : vector<32x128xf32>
    %c0_12 = arith.constant 0 : index
    %c0_13 = arith.constant 0 : index
    %31 = vector.load %arg4[%c0_12, %c0_13] : memref<1x128xf32, #tpu.memory_space<vmem>>, vector<1x128xf32>
    %32 = vector.broadcast %31 : vector<1x128xf32> to vector<32x128xf32>
    %33 = arith.mulf %30, %32 : vector<32x128xf32>
    %c0_14 = arith.constant 0 : index
    %c0_15 = arith.constant 0 : index
    %34 = vector.load %arg5[%c0_14, %c0_15] : memref<1x128xf32, #tpu.memory_space<vmem>>, vector<1x128xf32>
    %35 = vector.broadcast %34 : vector<1x128xf32> to vector<32x128xf32>
    %36 = arith.addf %33, %35 : vector<32x128xf32>
    %37 = arith.truncf %36 : vector<32x128xf32> to vector<32x128xbf16>
    %c0_16 = arith.constant 0 : index
    %c0_17 = arith.constant 0 : index
    %38 = vector.load %arg6[%c0_16, %c0_17] : memref<128x128xbf16, #tpu.memory_space<vmem>>, vector<128x128xbf16>
    %cst_18 = arith.constant dense<0.000000e+00> : vector<32x128xf32>
    %39 = tpu.matmul %37, %38, %cst_18 {dimension_numbers = #tpu.dot_dimension_numbers<[1], [0], [0], [1], [0, 0, 1, 1], [], []>} : vector<32x128xbf16>, vector<128x128xbf16>, vector<32x128xf32> -> vector<32x128xf32>
    %c0_19 = arith.constant 0 : index
    %c0_20 = arith.constant 0 : index
    %40 = vector.load %arg7[%c0_19, %c0_20] : memref<1x128xf32, #tpu.memory_space<vmem>>, vector<1x128xf32>
    %41 = vector.broadcast %40 : vector<1x128xf32> to vector<32x128xf32>
    %42 = arith.addf %39, %41 : vector<32x128xf32>
    %cst_21 = arith.constant 0.000000e+00 : f32
    %43 = vector.broadcast %cst_21 : f32 to vector<32x128xf32>
    %44 = arith.maximumf %42, %43 : vector<32x128xf32>
    %cst_22 = arith.constant dense<0.000000e+00> : vector<32xf32>
    %45 = vector.multi_reduction <add>, %44, %cst_22 [1] : vector<32x128xf32> to vector<32xf32>
    %46 = vector.shape_cast %45 : vector<32xf32> to vector<32x1xf32>
    %cst_23 = arith.constant 0.020833334 : f32
    %47 = vector.broadcast %cst_23 : f32 to vector<32x1xf32>
    %48 = arith.mulf %46, %47 : vector<32x1xf32>
    %49 = vector.broadcast %48 : vector<32x1xf32> to vector<32x128xf32>
    %50 = arith.subf %44, %49 : vector<32x128xf32>
    %51 = tpu.iota {dimensions = array<i32: 1>} : vector<1x128xi32>
    %c48_i32 = arith.constant 48 : i32
    %52 = vector.broadcast %c48_i32 : i32 to vector<1x128xi32>
    %53 = arith.cmpi slt, %51, %52 : vector<1x128xi32>
    %cst_24 = arith.constant 0.000000e+00 : f32
    %54 = vector.shape_cast %53 : vector<1x128xi1> to vector<1x128xi1>
    %55 = vector.broadcast %54 : vector<1x128xi1> to vector<32x128xi1>
    %56 = vector.broadcast %cst_24 : f32 to vector<32x128xf32>
    %57 = arith.select %55, %50, %56 : vector<32x128xi1>, vector<32x128xf32>
    %58 = arith.mulf %57, %57 : vector<32x128xf32>
    %cst_25 = arith.constant dense<0.000000e+00> : vector<32xf32>
    %59 = vector.multi_reduction <add>, %58, %cst_25 [1] : vector<32x128xf32> to vector<32xf32>
    %60 = vector.shape_cast %59 : vector<32xf32> to vector<32x1xf32>
    %cst_26 = arith.constant 0.020833334 : f32
    %61 = vector.broadcast %cst_26 : f32 to vector<32x1xf32>
    %62 = arith.mulf %60, %61 : vector<32x1xf32>
    %cst_27 = arith.constant 9.99999974E-6 : f32
    %63 = vector.broadcast %cst_27 : f32 to vector<32x1xf32>
    %64 = arith.addf %62, %63 : vector<32x1xf32>
    %65 = math.rsqrt %64 : vector<32x1xf32>
    %66 = vector.broadcast %65 : vector<32x1xf32> to vector<32x128xf32>
    %67 = arith.mulf %50, %66 : vector<32x128xf32>
    %c0_28 = arith.constant 0 : index
    %c0_29 = arith.constant 0 : index
    %68 = vector.load %arg8[%c0_28, %c0_29] : memref<1x128xf32, #tpu.memory_space<vmem>>, vector<1x128xf32>
    %69 = vector.broadcast %68 : vector<1x128xf32> to vector<32x128xf32>
    %70 = arith.mulf %67, %69 : vector<32x128xf32>
    %c0_30 = arith.constant 0 : index
    %c0_31 = arith.constant 0 : index
    %71 = vector.load %arg9[%c0_30, %c0_31] : memref<1x128xf32, #tpu.memory_space<vmem>>, vector<1x128xf32>
    %72 = vector.broadcast %71 : vector<1x128xf32> to vector<32x128xf32>
    %73 = arith.addf %70, %72 : vector<32x128xf32>
    %74 = arith.truncf %73 : vector<32x128xf32> to vector<32x128xbf16>
    %c0_32 = arith.constant 0 : index
    %c0_33 = arith.constant 0 : index
    %75 = vector.load %arg10[%c0_32, %c0_33] : memref<128x128xbf16, #tpu.memory_space<vmem>>, vector<128x128xbf16>
    %cst_34 = arith.constant dense<0.000000e+00> : vector<32x128xf32>
    %76 = tpu.matmul %74, %75, %cst_34 {dimension_numbers = #tpu.dot_dimension_numbers<[1], [0], [0], [1], [0, 0, 1, 1], [], []>} : vector<32x128xbf16>, vector<128x128xbf16>, vector<32x128xf32> -> vector<32x128xf32>
    %c0_35 = arith.constant 0 : index
    %c0_36 = arith.constant 0 : index
    %77 = vector.load %arg11[%c0_35, %c0_36] : memref<1x128xf32, #tpu.memory_space<vmem>>, vector<1x128xf32>
    %78 = vector.broadcast %77 : vector<1x128xf32> to vector<32x128xf32>
    %79 = arith.addf %76, %78 : vector<32x128xf32>
    %c0_37 = arith.constant 0 : index
    %c0_38 = arith.constant 0 : index
    %80 = vector.load %arg12[%c0_37, %c0_38] : memref<32x128xf32, #tpu.memory_space<vmem>>, vector<32x128xf32>
    tpu.vector_store %arg12[%c0_37, %c0_38], %79 {strides = array<i32>} : memref<32x128xf32, #tpu.memory_space<vmem>>, vector<32x128xf32>,
    return
  }
  func.func @transform_0(%arg0: i32) -> (i32, i32) {
    %c0_i32 = arith.constant 0 : i32
    %c0_i32_0 = arith.constant 0 : i32
    return %arg0, %c0_i32 : i32, i32
  }
  func.func @transform_1(%arg0: i32) -> (i32, i32) {
    %c0_i32 = arith.constant 0 : i32
    %c0_i32_0 = arith.constant 0 : i32
    %c0_i32_1 = arith.constant 0 : i32
    return %c0_i32, %c0_i32_0 : i32, i32
  }
  func.func @transform_2(%arg0: i32) -> (i32, i32) {
    %c0_i32 = arith.constant 0 : i32
    %c0_i32_0 = arith.constant 0 : i32
    %c0_i32_1 = arith.constant 0 : i32
    return %c0_i32, %c0_i32_0 : i32, i32
  }
  func.func @transform_3(%arg0: i32) -> (i32, i32) {
    %c0_i32 = arith.constant 0 : i32
    %c0_i32_0 = arith.constant 0 : i32
    %c0_i32_1 = arith.constant 0 : i32
    return %c0_i32, %c0_i32_0 : i32, i32
  }
  func.func @transform_4(%arg0: i32) -> (i32, i32) {
    %c0_i32 = arith.constant 0 : i32
    %c0_i32_0 = arith.constant 0 : i32
    %c0_i32_1 = arith.constant 0 : i32
    return %c0_i32, %c0_i32_0 : i32, i32
  }
  func.func @transform_5(%arg0: i32) -> (i32, i32) {
    %c0_i32 = arith.constant 0 : i32
    %c0_i32_0 = arith.constant 0 : i32
    %c0_i32_1 = arith.constant 0 : i32
    return %c0_i32, %c0_i32_0 : i32, i32
  }
  func.func @transform_6(%arg0: i32) -> (i32, i32) {
    %c0_i32 = arith.constant 0 : i32
    %c0_i32_0 = arith.constant 0 : i32
    %c0_i32_1 = arith.constant 0 : i32
    return %c0_i32, %c0_i32_0 : i32, i32
  }
  func.func @transform_7(%arg0: i32) -> (i32, i32) {
    %c0_i32 = arith.constant 0 : i32
    %c0_i32_0 = arith.constant 0 : i32
    %c0_i32_1 = arith.constant 0 : i32
    return %c0_i32, %c0_i32_0 : i32, i32
  }
  func.func @transform_8(%arg0: i32) -> (i32, i32) {
    %c0_i32 = arith.constant 0 : i32
    %c0_i32_0 = arith.constant 0 : i32
    %c0_i32_1 = arith.constant 0 : i32
    return %c0_i32, %c0_i32_0 : i32, i32
  }
  func.func @transform_9(%arg0: i32) -> (i32, i32) {
    %c0_i32 = arith.constant 0 : i32
    %c0_i32_0 = arith.constant 0 : i32
    %c0_i32_1 = arith.constant 0 : i32
    return %c0_i32, %c0_i32_0 : i32, i32
  }
  func.func @transform_10(%arg0: i32) -> (i32, i32) {
    %c0_i32 = arith.constant 0 : i32
    %c0_i32_0 = arith.constant 0 : i32
    %c0_i32_1 = arith.constant 0 : i32
    return %c0_i32, %c0_i32_0 : i32, i32
  }
  func.func @transform_11(%arg0: i32) -> (i32, i32) {
    %c0_i32 = arith.constant 0 : i32
    %c0_i32_0 = arith.constant 0 : i32
    return %arg0, %c0_i32 : i32, i32
  }
}

</mosaic_0001>

<bundles_post_ra>
// kernel: tpu_custom_call.1
= control target key start
LH: loop header
LB: loop body
LE: loop exit
PB: predicated region body
PF: predicated region fallthrough
CT: control target
= control target key end

     0   :  { %s1887_s0 = inlined_call_operand.hbm [shape: bf16[64,128], index: 0, kind: input, shape index: {}]   ;;  %s1888_s1 = inlined_call_operand.hbm [shape: bf16[128,128], index: 1, kind: input, shape index: {}]   ;;  %s1889_s2 = inlined_call_operand.vmem [shape: f32[1,128], index: 2, kind: input, shape index: {}]   ;;  %s1890_s3 = inlined_call_operand.vmem [shape: f32[1,128], index: 3, kind: input, shape index: {}]   ;;  %s1891_s4 = inlined_call_operand.vmem [shape: f32[1,128], index: 4, kind: input, shape index: {}]   ;;  %s1892_s5 = inlined_call_operand.hbm [shape: bf16[128,128], index: 5, kind: input, shape index: {}]   ;;  %s1893_s6 = inlined_call_operand.vmem [shape: f32[1,128], index: 6, kind: input, shape index: {}]   ;;  %s1894_s7 = inlined_call_operand.vmem [shape: f32[1,128], index: 7, kind: input, shape index: {}]   ;;  %s1895_s8 = inlined_call_operand.vmem [shape: f32[1,128], index: 8, kind: input, shape index: {}]   ;;  %s1896_s9 = inlined_call_operand.hbm [shape: bf16[128,128], index: 9, kind: input, shape index: {}]   ;;  %s1897_s10 = inlined_call_operand.vmem [shape: f32[1,128], index: 10, kind: input, shape index: {}]   ;;  %s1898_s11 = inlined_call_operand.hbm [shape: f32[64,128], index: 11, kind: output, shape index: {}]  }
   0x1   :  { %1906 = sst [smem:[#allocation17_spill]] %s1888_s1 }
   0x2   :  { %1907 = sst [smem:[#allocation18_spill]] %s1892_s5 }
   0x3   :  { %1908 = sst [smem:[#allocation19_spill]] %s1896_s9 }
   0x4   :  { %16 = vsyncpa [#allocation3], 0 }
   0x5   :  { %18 = vsyncpa [#allocation3 + $0x1], 0 }
   0x6   :  { %19 = vsyncpa [#allocation6], 0 }
   0x7   :  { %20 = vsyncpa [#allocation9], 0 }
   0x8   :  { %21 = vsyncpa [#allocation4], 0 }
   0x9   :  { %23 = vsyncpa [#allocation4 + $0x1], 0  ;;  %s1625_s17 = smov 0   ;;  %s1627_s18 = smov 0  }
   0xa   :  { %s1629_s19 = smov 0   ;;  %s1631_s20 = smov 0  }
   0xb LB: > { %1909 = sst [smem:[#allocation15_spill]] %s1550_s19  ;;  %s1646_s21 = sadd.s32 4294967295, %s1554_s20   ;;  %s1554_s20 = sphi %s1631_s20, %s1935_s20   ;;  %s1550_s19 = sphi %s1629_s19, %s1932_s19   ;;  %s1546_s18 = sphi %s1627_s18, %s1934_s18   ;;  %s1542_s17 = sphi %s1625_s17, %s1933_s17  }
   0xc   : > { %s1108_s22 = sadd.s32 4294967294, %s1554_s20   ;;  %p49_p0 = scmp.ne.s32.totalorder %s1546_s18, %s1542_s17 }
   0xd   : > { %p1899_p1 = scmp.eq.s32.totalorder %s1646_s21, 0  ;;  %p283_p2 = scmp.eq.s32.totalorder %s1646_s21, 1 }
   0xe   : > { %p289_p3 = scmp.eq.s32.totalorder %s1108_s22, 1  ;;  %p1109_p5 = scmp.ge.s32.totalorder %s1554_s20, 1 }
   0xf   : > { %p1655_p4 = por %p1899_p1, %p49_p0  ;;  %p296_p7 = scmp.lt.s32.totalorder %s1554_s20, 3 }
  0x10   : > { %p1660_p6 = por %p289_p3, %p49_p0  ;;  %s1556_s26 = smov [#allocation5]  }
  0x11   : > { %s1910_s23 = scalar_select %p1655_p4, 1, 0 }
  0x12   : > { %s1911_s24 = scalar_select %p1660_p6, 1, 0 }
  0x13   : > { %p1665_p8 = pnand %p1109_p5, %p296_p7  ;;  %s308_s27 = sshll.u32 %s1556_s26, 4  ;;  %s309_s27 = int_to_ptr.vmem [resolvable:$true] %s308_s27 }
  0x14   : > { %s1557_s29 = smov [#allocation7]   ;;  %s1558_s12 = smov [#allocation8]  }
  0x15   : > { %s1912_s25 = scalar_select %p1665_p8, 1, 0 }
  0x16   : > { %p1269_p9 = pneg %p1665_p8  ;;  %s330_s30 = sshll.u32 %s1557_s29, 4  ;;  %s331_s30 = int_to_ptr.vmem [resolvable:$true] %s330_s30 }
  0x17   : > { %s352_s13 = sshll.u32 %s1558_s12, 4  ;;  %s1387_s14 = scalar_lea.vmem %s309_s27, 1024  ;;  %s353_s13 = int_to_ptr.vmem [resolvable:$true] %s352_s13 }
  0x18   : > { %p1674_p11 = pnand %p1269_p9, %p1899_p1  ;;  %p1388_p13 = scmp.ne.s32.totalorder %s309_s27, %s1387_s14 }
  0x19   : > { %p1395_p5 = scmp.lt.s32.totalorder %s309_s27, %s309_s27  ;;  %p1396_p7 = scmp.lt.s32.totalorder %s1387_s14, %s1387_s14 }
  0x1a   : > { %p1378_p12 = pneg %p1674_p11 }
  0x1b   : > { %p1397_p9 = por %p1396_p7, %p1395_p5 }
  0x1c   : > { %p1390_p0 = pnand %p1388_p13, %p1378_p12 }
  0x1e   : > { %p1391_p3 = pneg %p1390_p0 }
  0x20   : > { %p1398_p10 = pnand %p1397_p9, %p1391_p3 }
  0x22   : > { %1401 = shalt.err (!%p1398_p10)
}
  0x23   : > { %s1900_s15 = smov 64   ;;  %s1901_s16 = smov 4  }
  0x24   : > { %s1914_s1 = sld [smem:[#allocation17_spill]]  ;;  %s1413_s29 = scalar_lea.vmem %s331_s30, 1024 }
  0x25   : > { %p1414_p13 = scmp.ne.s32.totalorder %s331_s30, %s1413_s29  ;;  %p1421_p3 = scmp.lt.s32.totalorder %s331_s30, %s331_s30 }
  0x26   : > { %p1422_p10 = scmp.lt.s32.totalorder %s1413_s29, %s1413_s29 }
  0x27   : > { %p1416_p0 = pnand %p1414_p13, %p1378_p12 }
  0x28   : > { %p1423_p7 = por %p1422_p10, %p1421_p3 }
  0x29   : > { %p1417_p5 = pneg %p1416_p0 }
  0x2a   : > { %1272 = dma.hbm_to_vmem [thread:$0]  (!%p1674_p11), %s1914_s1, 1024, %s309_s27, [#allocation6], %s1900_s15, %s1900_s15, %s1901_s16  }
  0x2b   : > { %p1424_p9 = pnand %p1423_p7, %p1417_p5 }
  0x2d   : > { %1427 = shalt.err (!%p1424_p9)
}
  0x2e   : > { %s1915_s5 = sld [smem:[#allocation18_spill]]  ;;  %s1439_s27 = scalar_lea.vmem %s353_s13, 1024 }
  0x2f   : > { %p1440_p1 = scmp.ne.s32.totalorder %s353_s13, %s1439_s27  ;;  %p1447_p3 = scmp.lt.s32.totalorder %s353_s13, %s353_s13 }
  0x30   : > { %p1448_p5 = scmp.lt.s32.totalorder %s1439_s27, %s1439_s27 }
  0x31   : > { %p1442_p13 = pnand %p1440_p1, %p1378_p12 }
  0x32   : > { %p1449_p10 = por %p1448_p5, %p1447_p3 }
  0x33   : > { %p1443_p0 = pneg %p1442_p13 }
  0x34   : > { %1275 = dma.hbm_to_vmem [thread:$0]  (!%p1674_p11), %s1915_s5, 1024, %s331_s30, [#allocation6], %s1900_s15, %s1900_s15, %s1901_s16  }
  0x35   : > { %p1450_p7 = pnand %p1449_p10, %p1443_p0 }
  0x37   : > { %1453 = shalt.err (!%p1450_p7)
}
  0x38   : > { %s1916_s9 = sld [smem:[#allocation19_spill]]  ;;  %s1714_s30 = sadd.s32 1, %s1554_s20  }
  0x39   : > { %s33_s28 = ssub.s32 %s1554_s20, %s1714_s30  ;;  %s36_s29 = sadd.s32 1, %s1550_s19 }
  0x3a   : > { %p34_p1 = scmp.eq.s32.totalorder %s33_s28, 0  ;;  %p43_p12 = scmp.ne.s32.totalorder %s1550_s19, %s1546_s18 }
  0x3b   : > { %p44_p9 = scmp.eq.s32.totalorder %s1554_s20, 0  ;;  %p1290_p13 = scmp.lt.s32.totalorder %s1554_s20, 2 }
  0x3c   : > { %s1724_s12 = scalar_select %p34_p1, %s1550_s19, %s36_s29  }
  0x3d   : > { %p45_p0 = por %p44_p9, %p43_p12  ;;  %p1728_p3 = por %p283_p2, %p43_p12 }
  0x3e   : > { %1278 = dma.hbm_to_vmem [thread:$0]  (!%p1674_p11), %s1916_s9, 1024, %s353_s13, [#allocation9], %s1900_s15, %s1900_s15, %s1901_s16  }
  0x3f   : > { %1917 = sst [smem:[#allocation16_spill]] %s1724_s12  ;;  %s369_s27 = sand.u32 1, %s1550_s19  }
  0x40   : > { %s1918_s14 = scalar_select %p1728_p3, 1, 0 }
  0x41   : > { %s1161_s22 = sshll.u32 %s1554_s20, 8  ;;  %s1114_s13 = sshll.u32 %s369_s27, 4 }
  0x42   : > { %s1737_s16 = scalar_lea.hbm %s1887_s0, %s1161_s22  ;;  %s373_s28 = scalar_lea.vmem [#allocation2], %s1114_s13 }
  0x43   : > { %s380_s29 = sshll.u32 %s373_s28, 4  ;;  %p1739_p11 = pnand %p1290_p13, %p45_p0  ;;  %s1743_s29 = int_to_ptr.vmem [resolvable:$true] %s380_s29 }
  0x44   : > { %s1745_s5 = scalar_lea.sflag [#allocation3], %s369_s27  ;;  %s1454_s9 = scalar_lea.hbm %s1737_s16, 256 }
  0x45   : > { %p1455_p2 = scmp.ne.s32.totalorder %s1737_s16, %s1454_s9  ;;  %p1456_p5 = pneg %p1739_p11 }
  0x46   : > { %s1459_s13 = scalar_lea.hbm %s1887_s0, 512  ;;  %p1460_p1 = scmp.lt.s32.totalorder %s1737_s16, %s1887_s0 }
  0x47   : > { %p1457_p10 = pnand %p1456_p5, %p1455_p2  ;;  %p1461_p12 = scmp.lt.s32.totalorder %s1459_s13, %s1454_s9 }
  0x49   : > { %p1458_p7 = pneg %p1457_p10  ;;  %p1462_p9 = por %p1461_p12, %p1460_p1 }
  0x4b   : > { %p1463_p13 = pnand %p1462_p9, %p1458_p7 }
  0x4d   : > { %1466 = shalt.err (!%p1463_p13)
}
  0x4e   : > { %s1467_s27 = scalar_lea.vmem %s1743_s29, 256  ;;  %s1561_s12 = smov [#allocation2]  }
  0x4f   : > { %p1468_p0 = scmp.ne.s32.totalorder %s1743_s29, %s1467_s27  ;;  %s1472_s19 = sshll.u32 %s1561_s12, 4  ;;  %s1473_s19 = int_to_ptr.vmem [resolvable:$false] %s1472_s19 }
  0x50   : > { %s1474_s15 = scalar_lea.vmem %s1473_s19, 512  ;;  %p1475_p10 = scmp.lt.s32.totalorder %s1743_s29, %s1473_s19 }
  0x51   : > { %p1470_p6 = pnand %p1468_p0, %p1456_p5  ;;  %p1476_p3 = scmp.lt.s32.totalorder %s1474_s15, %s1467_s27 }
  0x53   : > { %p1471_p2 = pneg %p1470_p6  ;;  %p1477_p4 = por %p1476_p3, %p1475_p10 }
  0x55   : > { %p1478_p8 = pnand %p1477_p4, %p1471_p2 }
  0x57   : > { %1481 = shalt.err (!%p1478_p8)
}
  0x58   : > { %s1920_s9 = smov 4   ;;  %s1921_s22 = smov 64  }
  0x59   : > { %1282 = dma.hbm_to_vmem [thread:$0]  (!%p1739_p11), %s1737_s16, 256, %s1743_s29, %s1745_s5, %s1921_s22, %s1921_s22, %s1920_s9  }
  0x5a   : > { %p1922_p6 = scmp.ne.s32.totalorder %s1912_s25, 0 }
  0x5b   : > { %s1772_s12 = sand.u32 (!%p1922_p6), 1, %s1546_s18   ;;  %p1923_p4 = scmp.ne.s32.totalorder (!%p1922_p6), %s1910_s23, 0 }
  0x5c   : > { %392 = sbr.rel (%p1922_p6) target bundleno = 1385 (0x569), region = 64  ;;  %s1118_s19 = sshll.u32 (!%p1922_p6), %s1772_s12, 4 }
  0x5d   : > { %s395_s13 = scalar_lea.sflag (!%p1922_p6), [#allocation3], %s1772_s12  ;;  %s1776_s26 = scalar_lea.vmem (!%p1922_p6), [#allocation2], %s1118_s19 }
  0x61   : > { %1525 = dma.done.wait (%p1923_p4), %s395_s13, 256  }
  0x62   : > { %1527 = vsyncadd (%p1923_p4), %s395_s13, 4294967040  ;;  %p1924_p8 = scmp.eq.s32.totalorder %s1646_s21, 0 }
  0x64   : > { %1529 = dma.done.wait (%p1924_p8), [#allocation6], 2048   ;;  %p1925_p3 = pmov %p1924_p8 }
  0x66   : > { %1531 = vsyncadd (%p1925_p3), [#allocation6], 4294965248  ;;  %p1926_p11 = pmov %p1925_p3 }
  0x67   : > { %p1927_p5 = pmov %p1925_p3 }
  0x68   : > { %1533 = dma.done.wait (%p1926_p11), [#allocation9], 1024  }
  0x69   : > { %1535 = vsyncadd (%p1927_p5), [#allocation9], 4294966272  ;;  %v1334_v0 = vld [vmem:[#allocation5 + $0x38] sm:$0xff]   ;;  %v1335_v1 = vld [vmem:[#allocation5 + $0x30] sm:$0xff]   ;;  %v608_v23 = vlaneseq  ;;  %s1122_s13 = sshll.u32 %s1772_s12, 5  ;;  %s1162_s25 = sshll.u32 %s1646_s21, 9 }
  0x6a   : > { %1193 = vmatprep.subr.bf16.mxu0 %v1334_v0  ;;  %v1336_v2 = vld [vmem:[#allocation5 + $0x28] sm:$0xff]   ;;  %v1337_v3 = vld [vmem:[#allocation5 + $0x20] sm:$0xff]   ;;  %v1338_v5 = vld [vmem:[#allocation5 + $0x18] sm:$0xff]   ;;  %s448_s5 = scalar_lea.vmem [#allocation10], %s1122_s13  ;;  %s1844_s28 = scalar_lea.hbm %s1898_s11, %s1162_s25 }
  0x6b   : > { %1194 = vmatpush3.bf16.msra.mxu0 %v1334_v0  ;;  %v1342_v4 = vld [vmem:[%s1776_s26] sm:$0xff]   ;;  %v1340_v7 = vld [vmem:[#allocation5 + $0x8] sm:$0xff]   ;;  %v1795_v27 = vand.u32 127, %v608_v23  ;;  %v1344_v45 = vld [vmem:[#allocation7 + $0x38] sm:$0xff]   ;;  %s1006_s23 = sshll.u32 %s448_s5, 4  ;;  %s993_s27 = scalar_lea.sflag [#allocation4], %s1772_s12  ;;  %s1839_s23 = int_to_ptr.vmem [resolvable:$true] %s1006_s23 }
  0x6c   : > { %1195 = vmatprep.subr.bf16.mxu0 %v1335_v1  ;;  %1209 = vmatprep.mubr.bf16.mxu0 %v1342_v4  ;;  %v1339_v6 = vld [vmem:[#allocation5 + $0x10] sm:$0xff]   ;;  %v1341_v8 = vld [vmem:[#allocation5] sm:$0xff]   ;;  %v1343_v9 = vld [vmem:[%s1776_s26 + $0x8] sm:$0xff]   ;;  %s1482_s15 = scalar_lea.vmem %s1839_s23, 512  ;;  %p1928_p1 = scmp.ne.s32.totalorder %s1918_s14, 0 }
  0x6d   : > { %v1123_v10 = vld [vmem:[%s1889_s2] ss:$0 sm:$0xff]  ;;  %vm610_vm0 = vcmp.lt.s32.totalorder %v1795_v27, 32  ;;  %1213 = vmatprep.subr.bf16.mxu1 %v1344_v45  ;;  %v1345_v46 = vld [vmem:[#allocation7 + $0x30] sm:$0xff]   ;;  %v1346_v47 = vld [vmem:[#allocation7 + $0x28] sm:$0xff]   ;;  %vm809_vm1 = vcmp.lt.s32.totalorder %v1795_v27, 48  ;;  %p1483_p7 = scmp.ne.s32.totalorder %s1839_s23, %s1482_s15 }
  0x6e   : > { %1214 = vmatpush3.bf16.msra.mxu1 %v1344_v45  ;;  %v1347_v48 = vld [vmem:[#allocation7 + $0x20] sm:$0xff]   ;;  %v1348_v49 = vld [vmem:[#allocation7 + $0x18] sm:$0xff]   ;;  %v1349_v50 = vld [vmem:[#allocation7 + $0x10] sm:$0xff]   ;;  %s1562_s21 = smov [#allocation10]  }
  0x6f   : > { %1196 = vmatpush3.bf16.msra.mxu0 %v1335_v1  ;;  %1215 = vmatprep.subr.bf16.mxu1 %v1345_v46  ;;  %v1350_v51 = vld [vmem:[#allocation7 + $0x8] sm:$0xff]   ;;  %v1351_v52 = vld [vmem:[#allocation7] sm:$0xff]   ;;  %p1484_p12 = pnand %p1483_p7, %p1928_p1  ;;  %s1486_s9 = sshll.u32 %s1562_s21, 4  ;;  %s1487_s9 = int_to_ptr.vmem [resolvable:$false] %s1486_s9 }
  0x70   : > { %1197 = vmatprep.subr.bf16.mxu0 %v1336_v2  ;;  %v1358_v27 = vld [vmem:[#allocation8 + $0x8] sm:$0xff]   ;;  %s1488_s22 = scalar_lea.vmem %s1487_s9, 1024  ;;  %p1489_p13 = scmp.lt.s32.totalorder %s1839_s23, %s1487_s9 }
  0x71   : > { %p1485_p9 = pneg %p1484_p12  ;;  %p1490_p0 = scmp.lt.s32.totalorder %s1488_s22, %s1482_s15 }
  0x72   : > { %1216 = vmatpush3.bf16.msra.mxu1 %v1345_v46 }
  0x73   : > { %1198 = vmatpush3.bf16.msra.mxu0 %v1336_v2  ;;  %1217 = vmatprep.subr.bf16.mxu1 %v1346_v47  ;;  %p1491_p2 = por %p1490_p0, %p1489_p13 }
  0x74   : > { %1199 = vmatprep.subr.bf16.mxu0 %v1337_v3 }
  0x75   : > { %p1492_p10 = pnand %p1491_p2, %p1485_p9 }
  0x76   : > { %1218 = vmatpush3.bf16.msra.mxu1 %v1346_v47 }
  0x77   : > { %1200 = vmatpush3.bf16.msra.mxu0 %v1337_v3  ;;  %1219 = vmatprep.subr.bf16.mxu1 %v1347_v48  ;;  %v1134_v3 = vld [vmem:[%s1890_s3] ss:$0 sm:$0xff] }
  0x78   : > { %1201 = vmatprep.subr.bf16.mxu0 %v1338_v5 }
  0x7a   : > { %1220 = vmatpush3.bf16.msra.mxu1 %v1347_v48 }
  0x7b   : > { %1202 = vmatpush3.bf16.msra.mxu0 %v1338_v5  ;;  %1221 = vmatprep.subr.bf16.mxu1 %v1348_v49 }
  0x7c   : > { %1203 = vmatprep.subr.bf16.mxu0 %v1339_v6 }
  0x7e   : > { %1222 = vmatpush3.bf16.msra.mxu1 %v1348_v49 }
  0x7f   : > { %1204 = vmatpush3.bf16.msra.mxu0 %v1339_v6  ;;  %1223 = vmatprep.subr.bf16.mxu1 %v1349_v50 }
  0x80   : > { %1205 = vmatprep.subr.bf16.mxu0 %v1340_v7 }
  0x82   : > { %1224 = vmatpush3.bf16.msra.mxu1 %v1349_v50 }
  0x83   : > { %1206 = vmatpush3.bf16.msra.mxu0 %v1340_v7  ;;  %1225 = vmatprep.subr.bf16.mxu1 %v1350_v51 }
  0x84   : > { %1207 = vmatprep.subr.bf16.mxu0 %v1341_v8 }
  0x86   : > { %1226 = vmatpush3.bf16.msra.mxu1 %v1350_v51 }
  0x87   : > { %1208 = vmatpush3.bf16.msra.mxu0 %v1341_v8  ;;  %1227 = vmatprep.subr.bf16.mxu1 %v1351_v52  ;;  %v1135_v8 = vld [vmem:[%s1891_s4] ss:$0 sm:$0xff] }
  0x8a   : > { %1210 = vmatmul.mubr.bf16.vlgmr.msra.gmra.mxu0 %v1343_v9  ;;  %1228 = vmatpush3.bf16.msra.mxu1 %v1351_v52 }
 0x14a   : > { %v1211_v11 = vpop.f32.mrf.mxu0 }
 0x14b   : > { %v582_v12 = vadd.f32 %v1211_v11, %v1123_v10 }
 0x14c   : > { %v573_v13 = vpop.f32.mrf.mxu0 }
 0x14d   : > { %v590_v14 = vmax.f32 %v582_v12, 0.0  ;;  %v574_v15 = vadd.f32 %v1123_v10, %v573_v13 }
 0x14e   : > { %v1212_v16 = vpop.f32.mrf.mxu0 }
 0x14f   : > { %v588_v17 = vmax.f32 %v574_v15, 0.0  ;;  %v585_v18 = vadd.f32 %v1212_v16, %v1123_v10  ;;  %596 = vadd.xlane.f32.xlu1 %v590_v14 }
 0x150   : > { %v576_v19 = vpop.f32.mrf.mxu0 }
 0x151   : > { %v591_v20 = vmax.f32 %v585_v18, 0.0  ;;  %v577_v21 = vadd.f32 %v1123_v10, %v576_v19  ;;  %592 = vadd.xlane.f32.xlu0 %v588_v17 }
 0x153   : > { %v589_v22 = vmax.f32 %v577_v21, 0.0  ;;  %598 = vadd.xlane.f32.xlu1 %v591_v20 }
 0x155   : > { %594 = vadd.xlane.f32.xlu0 %v589_v22 }
 0x1d8   : > { %v597_v24 = vpop.xlane.xlu1 %596 }
 0x1d9   : > { %v602_v25 = vmul.f32 0.03125, %v597_v24 }
 0x1da   : > { %v593_v26 = vpop.xlane.xlu0 %592 }
 0x1db   : > { %v600_v28 = vmul.f32 0.03125, %v593_v26  ;;  %v1797_v30 = vsub.f32 %v590_v14, %v602_v25 }
 0x1dc   : > { %v599_v29 = vpop.xlane.xlu1 %598 }
 0x1dd   : > { %v604_v31 = vsub.f32 %v588_v17, %v600_v28  ;;  %v603_v32 = vmul.f32 0.03125, %v599_v29  ;;  %v615_v39 = vsel %vm610_vm0, %v1797_v30, 0.0 }
 0x1de   : > { %v595_v33 = vpop.xlane.xlu0 %594  ;;  %v619_v41 = vmul.f32 %v615_v39, %v615_v39 }
 0x1df   : > { %v601_v34 = vmul.f32 0.03125, %v595_v33  ;;  %v613_v35 = vsel %vm610_vm0, %v604_v31, 0.0  ;;  %v1800_v37 = vsub.f32 %v591_v20, %v603_v32 }
 0x1e0   : > { %v617_v36 = vmul.f32 %v613_v35, %v613_v35 }
 0x1e1   : > { %v605_v38 = vsub.f32 %v589_v22, %v601_v34  ;;  %v616_v43 = vsel %vm610_vm0, %v1800_v37, 0.0  ;;  %v1136_v22 = vld [vmem:[%s1893_s6] ss:$0 sm:$0xff] }
 0x1e2   : > { %621 = vadd.xlane.f32.xlu0 %v617_v36  ;;  %v620_v44 = vmul.f32 %v616_v43, %v616_v43 }
 0x1e3   : > { %v614_v40 = vsel %vm610_vm0, %v605_v38, 0.0 }
 0x1e4   : > { %v618_v42 = vmul.f32 %v614_v40, %v614_v40 }
 0x1e6   : > { %625 = vadd.xlane.f32.xlu0 %v619_v41  ;;  %623 = vadd.xlane.f32.xlu1 %v618_v42 }
 0x1ea   : > { %627 = vadd.xlane.f32.xlu1 %v620_v44 }
 0x26b   : > { %v622_v53 = vpop.xlane.xlu0 %621 }
 0x26c   : > { %v629_v54 = vmul.f32 0.03125, %v622_v53 }
 0x26e   : > { %v633_v55 = vadd.f32 1e-05, %v629_v54 }
 0x26f   : > { %v624_v56 = vpop.xlane.xlu1 %623  ;;  %v626_v57 = vpop.xlane.xlu0 %625 }
 0x270   : > { %1360 = vrsqrt.f32 %v633_v55  ;;  %v630_v58 = vmul.f32 0.03125, %v624_v56  ;;  %v631_v59 = vmul.f32 0.03125, %v626_v57  ;;  %v1352_v55 = vld [vmem:[#allocation8 + $0x38] sm:$0xff]   ;;  %v1353_v56 = vld [vmem:[#allocation8 + $0x30] sm:$0xff]   ;;  %v1354_v57 = vld [vmem:[#allocation8 + $0x28] sm:$0xff]  }
 0x271   : > { %1233 = vmatprep.subr.bf16.mxu0 %v1352_v55 }
 0x272   : > { %v634_v60 = vadd.f32 1e-05, %v630_v58  ;;  %v635_v61 = vadd.f32 1e-05, %v631_v59  ;;  %1234 = vmatpush3.bf16.msra.mxu0 %v1352_v55  ;;  %v1355_v58 = vld [vmem:[#allocation8 + $0x20] sm:$0xff]   ;;  %v1356_v59 = vld [vmem:[#allocation8 + $0x18] sm:$0xff]  }
 0x273   : > { %v628_v62 = vpop.xlane.xlu1 %627  ;;  %1235 = vmatprep.subr.bf16.mxu0 %v1353_v56 }
 0x274   : > { %1362 = vrsqrt.f32 %v634_v60  ;;  %v632_v63 = vmul.f32 0.03125, %v628_v62  ;;  %v1357_v60 = vld [vmem:[#allocation8 + $0x10] sm:$0xff]  }
 0x275   : > { %1364 = vrsqrt.f32 %v635_v61  ;;  %v1359_v61 = vld [vmem:[#allocation8] sm:$0xff]  }
 0x276   : > { %v636_v0 = vadd.f32 1e-05, %v632_v63  ;;  %1236 = vmatpush3.bf16.msra.mxu0 %v1353_v56 }
 0x277   : > { %1237 = vmatprep.subr.bf16.mxu0 %v1354_v57 }
 0x278   : > { %1366 = vrsqrt.f32 %v636_v0 }
 0x27a   : > { %1238 = vmatpush3.bf16.msra.mxu0 %v1354_v57 }
 0x27b   : > { %1239 = vmatprep.subr.bf16.mxu0 %v1355_v58 }
 0x27d   : > { %v1361_v1 = vpop.eup %1360 }
 0x27e   : > { %v641_v2 = vmul.f32 %v1361_v1, %v604_v31  ;;  %1240 = vmatpush3.bf16.msra.mxu0 %v1355_v58 }
 0x27f   : > { %1241 = vmatprep.subr.bf16.mxu0 %v1356_v59 }
 0x280   : > { %v652_v7 = vmul.f32 %v1134_v3, %v641_v2 }
 0x281   : > { %v1363_v4 = vpop.eup %1362 }
 0x282   : > { %v1365_v5 = vpop.eup %1364  ;;  %v642_v6 = vmul.f32 %v1363_v4, %v605_v38  ;;  %v663_v12 = vadd.f32 %v1135_v8, %v652_v7  ;;  %1242 = vmatpush3.bf16.msra.mxu0 %v1356_v59 }
 0x283   : > { %v643_v9 = vmul.f32 %v1365_v5, %v1797_v30  ;;  %1243 = vmatprep.subr.bf16.mxu0 %v1357_v60 }
 0x284   : > { %v653_v10 = vmul.f32 %v1134_v3, %v642_v6 }
 0x285   : > { %v1367_v11 = vpop.eup %1366  ;;  %v654_v15 = vmul.f32 %v1134_v3, %v643_v9 }
 0x286   : > { %v664_v13 = vadd.f32 %v1135_v8, %v653_v10  ;;  %v644_v14 = vmul.f32 %v1367_v11, %v1800_v37  ;;  %1244 = vmatpush3.bf16.msra.mxu0 %v1357_v60 }
 0x287   : > { %v665_v18 = vadd.f32 %v1135_v8, %v654_v15  ;;  %1245 = vmatprep.subr.bf16.mxu0 %v1358_v27 }
 0x288   : > { %v667_v16 = vpack.c.bf16 %v664_v13, %v663_v12  ;;  %v655_v17 = vmul.f32 %v1134_v3, %v644_v14  ;;  %v1145_v12 = vld [vmem:[%s1894_s7] ss:$0 sm:$0xff] }
 0x28a   : > { %1229 = vmatprep.mubr.bf16.mxu1 %v667_v16  ;;  %v666_v19 = vadd.f32 %v1135_v8, %v655_v17  ;;  %1246 = vmatpush3.bf16.msra.mxu0 %v1358_v27  ;;  %v1146_v17 = vld [vmem:[%s1895_s8] ss:$0 sm:$0xff] }
 0x28b   : > { %1247 = vmatprep.subr.bf16.mxu0 %v1359_v61 }
 0x28c   : > { %v668_v20 = vpack.c.bf16 %v666_v19, %v665_v18 }
 0x28e   : > { %1230 = vmatmul.mubr.bf16.vlgmr.msra.gmra.mxu1 %v668_v20  ;;  %1248 = vmatpush3.bf16.msra.mxu0 %v1359_v61 }
 0x34e   : > { %v1231_v21 = vpop.f32.mrf.mxu1 }
 0x34f   : > { %v783_v26 = vadd.f32 %v1231_v21, %v1136_v22 }
 0x350   : > { %v774_v23 = vpop.f32.mrf.mxu1 }
 0x351   : > { %v775_v24 = vadd.f32 %v1136_v22, %v774_v23  ;;  %v791_v31 = vmax.f32 %v783_v26, 0.0 }
 0x352   : > { %v1232_v25 = vpop.f32.mrf.mxu1 }
 0x353   : > { %v789_v28 = vmax.f32 %v775_v24, 0.0  ;;  %v786_v32 = vadd.f32 %v1232_v25, %v1136_v22 }
 0x354   : > { %v777_v29 = vpop.f32.mrf.mxu1 }
 0x355   : > { %v778_v30 = vadd.f32 %v1136_v22, %v777_v29  ;;  %793 = vadd.xlane.f32.xlu0 %v789_v28  ;;  %v792_v34 = vmax.f32 %v786_v32, 0.0 }
 0x357   : > { %v790_v33 = vmax.f32 %v778_v30, 0.0 }
 0x359   : > { %795 = vadd.xlane.f32.xlu1 %v790_v33  ;;  %797 = vadd.xlane.f32.xlu0 %v791_v31 }
 0x35d   : > { %799 = vadd.xlane.f32.xlu1 %v792_v34 }
 0x3de   : > { %v794_v35 = vpop.xlane.xlu0 %793 }
 0x3df   : > { %v801_v36 = vmul.f32 0.020833334, %v794_v35 }
 0x3e1   : > { %v1816_v37 = vsub.f32 %v789_v28, %v801_v36 }
 0x3e2   : > { %v796_v38 = vpop.xlane.xlu1 %795  ;;  %v798_v39 = vpop.xlane.xlu0 %797 }
 0x3e3   : > { %v802_v40 = vmul.f32 0.020833334, %v796_v38  ;;  %v803_v41 = vmul.f32 0.020833334, %v798_v39  ;;  %v812_v42 = vsel %vm809_vm1, %v1816_v37, 0.0 }
 0x3e4   : > { %v816_v43 = vmul.f32 %v812_v42, %v812_v42 }
 0x3e5   : > { %v806_v44 = vsub.f32 %v790_v33, %v802_v40  ;;  %v807_v45 = vsub.f32 %v791_v31, %v803_v41  ;;  %v1147_v31 = vld [vmem:[%s1897_s10] ss:$0 sm:$0xff] }
 0x3e6   : > { %v800_v46 = vpop.xlane.xlu1 %799  ;;  %820 = vadd.xlane.f32.xlu0 %v816_v43 }
 0x3e7   : > { %v804_v47 = vmul.f32 0.020833334, %v800_v46  ;;  %v813_v48 = vsel %vm809_vm1, %v806_v44, 0.0  ;;  %v814_v49 = vsel %vm809_vm1, %v807_v45, 0.0 }
 0x3e8   : > { %v817_v50 = vmul.f32 %v813_v48, %v813_v48  ;;  %v818_v51 = vmul.f32 %v814_v49, %v814_v49 }
 0x3e9   : > { %v808_v52 = vsub.f32 %v792_v34, %v804_v47 }
 0x3ea   : > { %822 = vadd.xlane.f32.xlu1 %v817_v50  ;;  %824 = vadd.xlane.f32.xlu0 %v818_v51 }
 0x3eb   : > { %v815_v53 = vsel %vm809_vm1, %v808_v52, 0.0 }
 0x3ec   : > { %v819_v54 = vmul.f32 %v815_v53, %v815_v53 }
 0x3ee   : > { %826 = vadd.xlane.f32.xlu1 %v819_v54 }
 0x46f   : > { %v821_v62 = vpop.xlane.xlu0 %820 }
 0x470   : > { %v828_v63 = vmul.f32 0.020833334, %v821_v62 }
 0x472   : > { %v832_v0 = vadd.f32 1e-05, %v828_v63 }
 0x473   : > { %v823_v1 = vpop.xlane.xlu1 %822  ;;  %v825_v2 = vpop.xlane.xlu0 %824 }
 0x474   : > { %1368 = vrsqrt.f32 %v832_v0  ;;  %v829_v3 = vmul.f32 0.020833334, %v823_v1  ;;  %v830_v4 = vmul.f32 0.020833334, %v825_v2 }
 0x476   : > { %v833_v5 = vadd.f32 1e-05, %v829_v3  ;;  %v834_v6 = vadd.f32 1e-05, %v830_v4 }
 0x477   : > { %v827_v7 = vpop.xlane.xlu1 %826 }
 0x478   : > { %1370 = vrsqrt.f32 %v833_v5  ;;  %v831_v8 = vmul.f32 0.020833334, %v827_v7 }
 0x479   : > { %1372 = vrsqrt.f32 %v834_v6 }
 0x47a   : > { %v835_v9 = vadd.f32 1e-05, %v831_v8 }
 0x47c   : > { %1374 = vrsqrt.f32 %v835_v9 }
 0x481   : > { %v1369_v10 = vpop.eup %1368 }
 0x482   : > { %v840_v11 = vmul.f32 %v1369_v10, %v1816_v37 }
 0x484   : > { %v851_v16 = vmul.f32 %v1145_v12, %v840_v11 }
 0x485   : > { %v1371_v13 = vpop.eup %1370 }
 0x486   : > { %v1373_v14 = vpop.eup %1372  ;;  %v841_v15 = vmul.f32 %v1371_v13, %v806_v44  ;;  %v862_v21 = vadd.f32 %v1146_v17, %v851_v16 }
 0x487   : > { %v842_v18 = vmul.f32 %v1373_v14, %v807_v45 }
 0x488   : > { %v852_v19 = vmul.f32 %v1145_v12, %v841_v15 }
 0x489   : > { %v1375_v20 = vpop.eup %1374  ;;  %v853_v24 = vmul.f32 %v1145_v12, %v842_v18 }
 0x48a   : > { %v863_v22 = vadd.f32 %v1146_v17, %v852_v19  ;;  %v843_v23 = vmul.f32 %v1375_v20, %v808_v52 }
 0x48b   : > { %v864_v28 = vadd.f32 %v1146_v17, %v853_v24 }
 0x48c   : > { %v866_v25 = vpack.c.bf16 %v863_v22, %v862_v21  ;;  %v854_v26 = vmul.f32 %v1145_v12, %v843_v23 }
 0x48e   : > { %1249 = vmatprep.mubr.bf16.mxu0 %v866_v25  ;;  %v865_v29 = vadd.f32 %v1146_v17, %v854_v26 }
 0x490   : > { %v867_v30 = vpack.c.bf16 %v865_v29, %v864_v28 }
 0x492   : > { %1250 = vmatmul.mubr.bf16.vlgmr.msra.gmra.mxu0 %v867_v30 }
 0x552   : > { %v1251_v32 = vpop.f32.mrf.mxu0 }
 0x553   : > { %v982_v33 = vadd.f32 %v1251_v32, %v1147_v31 }
 0x554   : > { %v973_v34 = vpop.f32.mrf.mxu0 }
 0x555   : > { %990 = vst [vmem:[%s448_s5 + $0x10] sm:$0xff] %v982_v33  ;;  %v974_v35 = vadd.f32 %v1147_v31, %v973_v34 }
 0x556   : > { %v1252_v36 = vpop.f32.mrf.mxu0 }
 0x557   : > { %988 = vst [vmem:[%s448_s5] sm:$0xff] %v974_v35  ;;  %v985_v37 = vadd.f32 %v1252_v36, %v1147_v31 }
 0x558   : > { %v976_v38 = vpop.f32.mrf.mxu0 }
 0x559   : > { %991 = vst [vmem:[%s448_s5 + $0x18] sm:$0xff] %v985_v37  ;;  %v977_v39 = vadd.f32 %v1147_v31, %v976_v38 }
 0x55b   : > { %989 = vst [vmem:[%s448_s5 + $0x8] sm:$0xff] %v977_v39 }
 0x55c   : > { %1495 = shalt.err (!%p1492_p10)
}
 0x55d   : > { %s1496_s19 = scalar_lea.hbm %s1844_s28, 512  ;;  %s1500_s1 = scalar_lea.hbm %s1898_s11, 1024 }
 0x55e   : > { %p1497_p6 = scmp.ne.s32.totalorder %s1844_s28, %s1496_s19  ;;  %p1501_p3 = scmp.lt.s32.totalorder %s1844_s28, %s1898_s11 }
 0x55f   : > { %p1502_p11 = scmp.lt.s32.totalorder %s1500_s1, %s1496_s19 }
 0x560   : > { %p1498_p4 = pnand %p1497_p6, %p1928_p1 }
 0x561   : > { %p1503_p5 = por %p1502_p11, %p1501_p3 }
 0x562   : > { %p1499_p8 = pneg %p1498_p4 }
 0x564   : > { %p1504_p7 = pnand %p1503_p5, %p1499_p8 }
 0x566   : > { %1507 = shalt.err (!%p1504_p7)
}
 0x567   : > { %s1563_s16 = smov 128   ;;  %s1564_s29 = smov 8  }
 0x568   : > { %1267 = dma.vmem_to_hbm [thread:$0]  (%p1928_p1), %s1839_s23, 512, %s1844_s28, %s993_s27, %s1563_s16, %s1563_s16, %s1564_s29  }
 0x569 PF: > { %s1021_s15 = sand.u32 1, %s1542_s17   ;;  %p1929_p12 = scmp.ne.s32.totalorder %s1911_s24, 0 }
 0x56a   : > { %p1930_p9 = scmp.ge.s32.totalorder %s1554_s20, 2  ;;  %s1022_s21 = scalar_lea.sflag [#allocation4], %s1021_s15 }
 0x56c   : > { %p1284_p13 = pnand %p1930_p9, %p1929_p12 }
 0x56e   : > { %p1285_p0 = pneg %p1284_p13 }
 0x570   : > { %1537 = dma.done.wait (%p1285_p0), %s1022_s21, 512  }
 0x571   : > { %1539 = vsyncadd (%p1285_p0), %s1022_s21, 4294966784  ;;  %s1931_s9 = sld [smem:[#allocation15_spill]]  ;;  %p26_p2 = scmp.ge.s32.totalorder %s1714_s30, 4  }
 0x572   : > { %s1932_s19 = sld [smem:[#allocation16_spill]]  ;;  %s1933_s17 = smov %s1546_s18 }
 0x573   : > { %s1935_s20 = smov %s1714_s30  ;;  %28 = sbr.rel (!%p26_p2) target bundleno = 11 (0xb), region = 121 }
 0x577   : > { %s1934_s18 = smov %s1931_s9 }
 0x578   :  { %1027 = vsyncpa [#allocation3], 1 }
 0x579   :  { %1029 = vsyncpa [#allocation3 + $0x1], 1 }
 0x57a   :  { %1030 = vsyncpa [#allocation6], 1 }
 0x57b   :  { %1031 = vsyncpa [#allocation9], 1 }
 0x57c   :  { %1032 = vsyncpa [#allocation4], 1 }
 0x57d   :  { %1034 = vsyncpa [#allocation4 + $0x1], 1 }

// kernel: tpu_custom_call.1
= control target key start
LH: loop header
LB: loop body
LE: loop exit
PB: predicated region body
PF: predicated region fallthrough
CT: control target
= control target key end

     0   :  { %s1887_s0 = inlined_call_operand.hbm [shape: bf16[64,128], index: 0, kind: input, shape index: {}]   ;;  %s1888_s1 = inlined_call_operand.hbm [shape: bf16[128,128], index: 1, kind: input, shape index: {}]   ;;  %s1889_s2 = inlined_call_operand.vmem [shape: f32[1,128], index: 2, kind: input, shape index: {}]   ;;  %s1890_s3 = inlined_call_operand.vmem [shape: f32[1,128], index: 3, kind: input, shape index: {}]   ;;  %s1891_s4 = inlined_call_operand.vmem [shape: f32[1,128], index: 4, kind: input, shape index: {}]   ;;  %s1892_s5 = inlined_call_operand.hbm [shape: bf16[128,128], index: 5, kind: input, shape index: {}]   ;;  %s1893_s6 = inlined_call_operand.vmem [shape: f32[1,128], index: 6, kind: input, shape index: {}]   ;;  %s1894_s7 = inlined_call_operand.vmem [shape: f32[1,128], index: 7, kind: input, shape index: {}]   ;;  %s1895_s8 = inlined_call_operand.vmem [shape: f32[1,128], index: 8, kind: input, shape index: {}]   ;;  %s1896_s9 = inlined_call_operand.hbm [shape: bf16[128,128], index: 9, kind: input, shape index: {}]   ;;  %s1897_s10 = inlined_call_operand.vmem [shape: f32[1,128], index: 10, kind: input, shape index: {}]   ;;  %s1898_s11 = inlined_call_operand.hbm [shape: f32[64,128], index: 11, kind: output, shape index: {}]  }
   0x1   :  { %1906 = sst [smem:[#allocation17_spill]] %s1888_s1 }
   0x2   :  { %1907 = sst [smem:[#allocation18_spill]] %s1892_s5 }
   0x3   :  { %1908 = sst [smem:[#allocation19_spill]] %s1896_s9 }
   0x4   :  { %16 = vsyncpa [#allocation3], 0 }
   0x5   :  { %18 = vsyncpa [#allocation3 + $0x1], 0 }
   0x6   :  { %19 = vsyncpa [#allocation6], 0 }
   0x7   :  { %20 = vsyncpa [#allocation9], 0 }
   0x8   :  { %21 = vsyncpa [#allocation4], 0 }
   0x9   :  { %23 = vsyncpa [#allocation4 + $0x1], 0  ;;  %s1625_s17 = smov 0   ;;  %s1627_s18 = smov 0  }
   0xa   :  { %s1629_s19 = smov 0   ;;  %s1631_s20 = smov 0  }
   0xb LB: > { %1909 = sst [smem:[#allocation15_spill]] %s1550_s19  ;;  %s1646_s21 = sadd.s32 4294967295, %s1554_s20   ;;  %s1554_s20 = sphi %s1631_s20, %s1935_s20   ;;  %s1550_s19 = sphi %s1629_s19, %s1932_s19   ;;  %s1546_s18 = sphi %s1627_s18, %s1934_s18   ;;  %s1542_s17 = sphi %s1625_s17, %s1933_s17  }
   0xc   : > { %s1108_s22 = sadd.s32 4294967294, %s1554_s20   ;;  %p49_p0 = scmp.ne.s32.totalorder %s1546_s18, %s1542_s17 }
   0xd   : > { %p1899_p1 = scmp.eq.s32.totalorder %s1646_s21, 0  ;;  %p283_p2 = scmp.eq.s32.totalorder %s1646_s21, 1 }
   0xe   : > { %p289_p3 = scmp.eq.s32.totalorder %s1108_s22, 1  ;;  %p1109_p5 = scmp.ge.s32.totalorder %s1554_s20, 1 }
   0xf   : > { %p1655_p4 = por %p1899_p1, %p49_p0  ;;  %p296_p7 = scmp.lt.s32.totalorder %s1554_s20, 3 }
  0x10   : > { %p1660_p6 = por %p289_p3, %p49_p0  ;;  %s1556_s26 = smov [#allocation5]  }
  0x11   : > { %s1910_s23 = scalar_select %p1655_p4, 1, 0 }
  0x12   : > { %s1911_s24 = scalar_select %p1660_p6, 1, 0 }
  0x13   : > { %p1665_p8 = pnand %p1109_p5, %p296_p7  ;;  %s308_s27 = sshll.u32 %s1556_s26, 4  ;;  %s309_s27 = int_to_ptr.vmem [resolvable:$true] %s308_s27 }
  0x14   : > { %s1557_s29 = smov [#allocation7]   ;;  %s1558_s12 = smov [#allocation8]  }
  0x15   : > { %s1912_s25 = scalar_select %p1665_p8, 1, 0 }
  0x16   : > { %p1269_p9 = pneg %p1665_p8  ;;  %s330_s30 = sshll.u32 %s1557_s29, 4  ;;  %s331_s30 = int_to_ptr.vmem [resolvable:$true] %s330_s30 }
  0x17   : > { %s352_s13 = sshll.u32 %s1558_s12, 4  ;;  %s1387_s14 = scalar_lea.vmem %s309_s27, 1024  ;;  %s353_s13 = int_to_ptr.vmem [resolvable:$true] %s352_s13 }
  0x18   : > { %p1674_p11 = pnand %p1269_p9, %p1899_p1  ;;  %p1388_p13 = scmp.ne.s32.totalorder %s309_s27, %s1387_s14 }
  0x19   : > { %p1395_p5 = scmp.lt.s32.totalorder %s309_s27, %s309_s27  ;;  %p1396_p7 = scmp.lt.s32.totalorder %s1387_s14, %s1387_s14 }
  0x1a   : > { %p1378_p12 = pneg %p1674_p11 }
  0x1b   : > { %p1397_p9 = por %p1396_p7, %p1395_p5 }
  0x1c   : > { %p1390_p0 = pnand %p1388_p13, %p1378_p12 }
  0x1e   : > { %p1391_p3 = pneg %p1390_p0 }
  0x20   : > { %p1398_p10 = pnand %p1397_p9, %p1391_p3 }
  0x22   : > { %1401 = shalt.err (!%p1398_p10)
}
  0x23   : > { %s1900_s15 = smov 64   ;;  %s1901_s16 = smov 4  }
  0x24   : > { %s1914_s1 = sld [smem:[#allocation17_spill]]  ;;  %s1413_s29 = scalar_lea.vmem %s331_s30, 1024 }
  0x25   : > { %p1414_p13 = scmp.ne.s32.totalorder %s331_s30, %s1413_s29  ;;  %p1421_p3 = scmp.lt.s32.totalorder %s331_s30, %s331_s30 }
  0x26   : > { %p1422_p10 = scmp.lt.s32.totalorder %s1413_s29, %s1413_s29 }
  0x27   : > { %p1416_p0 = pnand %p1414_p13, %p1378_p12 }
  0x28   : > { %p1423_p7 = por %p1422_p10, %p1421_p3 }
  0x29   : > { %p1417_p5 = pneg %p1416_p0 }
  0x2a   : > { %1272 = dma.hbm_to_vmem [thread:$0]  (!%p1674_p11), %s1914_s1, 1024, %s309_s27, [#allocation6], %s1900_s15, %s1900_s15, %s1901_s16  }
  0x2b   : > { %p1424_p9 = pnand %p1423_p7, %p1417_p5 }
  0x2d   : > { %1427 = shalt.err (!%p1424_p9)
}
  0x2e   : > { %s1915_s5 = sld [smem:[#allocation18_spill]]  ;;  %s1439_s27 = scalar_lea.vmem %s353_s13, 1024 }
  0x2f   : > { %p1440_p1 = scmp.ne.s32.totalorder %s353_s13, %s1439_s27  ;;  %p1447_p3 = scmp.lt.s32.totalorder %s353_s13, %s353_s13 }
  0x30   : > { %p1448_p5 = scmp.lt.s32.totalorder %s1439_s27, %s1439_s27 }
  0x31   : > { %p1442_p13 = pnand %p1440_p1, %p1378_p12 }
  0x32   : > { %p1449_p10 = por %p1448_p5, %p1447_p3 }
  0x33   : > { %p1443_p0 = pneg %p1442_p13 }
  0x34   : > { %1275 = dma.hbm_to_vmem [thread:$0]  (!%p1674_p11), %s1915_s5, 1024, %s331_s30, [#allocation6], %s1900_s15, %s1900_s15, %s1901_s16  }
  0x35   : > { %p1450_p7 = pnand %p1449_p10, %p1443_p0 }
  0x37   : > { %1453 = shalt.err (!%p1450_p7)
}
  0x38   : > { %s1916_s9 = sld [smem:[#allocation19_spill]]  ;;  %s1714_s30 = sadd.s32 1, %s1554_s20  }
  0x39   : > { %s33_s28 = ssub.s32 %s1554_s20, %s1714_s30  ;;  %s36_s29 = sadd.s32 1, %s1550_s19 }
  0x3a   : > { %p34_p1 = scmp.eq.s32.totalorder %s33_s28, 0  ;;  %p43_p12 = scmp.ne.s32.totalorder %s1550_s19, %s1546_s18 }
  0x3b   : > { %p44_p9 = scmp.eq.s32.totalorder %s1554_s20, 0  ;;  %p1290_p13 = scmp.lt.s32.totalorder %s1554_s20, 2 }
  0x3c   : > { %s1724_s12 = scalar_select %p34_p1, %s1550_s19, %s36_s29  }
  0x3d   : > { %p45_p0 = por %p44_p9, %p43_p12  ;;  %p1728_p3 = por %p283_p2, %p43_p12 }
  0x3e   : > { %1278 = dma.hbm_to_vmem [thread:$0]  (!%p1674_p11), %s1916_s9, 1024, %s353_s13, [#allocation9], %s1900_s15, %s1900_s15, %s1901_s16  }
  0x3f   : > { %1917 = sst [smem:[#allocation16_spill]] %s1724_s12  ;;  %s369_s27 = sand.u32 1, %s1550_s19  }
  0x40   : > { %s1918_s14 = scalar_select %p1728_p3, 1, 0 }
  0x41   : > { %s1161_s22 = sshll.u32 %s1554_s20, 8  ;;  %s1114_s13 = sshll.u32 %s369_s27, 4 }
  0x42   : > { %s1737_s16 = scalar_lea.hbm %s1887_s0, %s1161_s22  ;;  %s373_s28 = scalar_lea.vmem [#allocation2], %s1114_s13 }
  0x43   : > { %s380_s29 = sshll.u32 %s373_s28, 4  ;;  %p1739_p11 = pnand %p1290_p13, %p45_p0  ;;  %s1743_s29 = int_to_ptr.vmem [resolvable:$true] %s380_s29 }
  0x44   : > { %s1745_s5 = scalar_lea.sflag [#allocation3], %s369_s27  ;;  %s1454_s9 = scalar_lea.hbm %s1737_s16, 256 }
  0x45   : > { %p1455_p2 = scmp.ne.s32.totalorder %s1737_s16, %s1454_s9  ;;  %p1456_p5 = pneg %p1739_p11 }
  0x46   : > { %s1459_s13 = scalar_lea.hbm %s1887_s0, 512  ;;  %p1460_p1 = scmp.lt.s32.totalorder %s1737_s16, %s1887_s0 }
  0x47   : > { %p1457_p10 = pnand %p1456_p5, %p1455_p2  ;;  %p1461_p12 = scmp.lt.s32.totalorder %s1459_s13, %s1454_s9 }
  0x49   : > { %p1458_p7 = pneg %p1457_p10  ;;  %p1462_p9 = por %p1461_p12, %p1460_p1 }
  0x4b   : > { %p1463_p13 = pnand %p1462_p9, %p1458_p7 }
  0x4d   : > { %1466 = shalt.err (!%p1463_p13)
}
  0x4e   : > { %s1467_s27 = scalar_lea.vmem %s1743_s29, 256  ;;  %s1561_s12 = smov [#allocation2]  }
  0x4f   : > { %p1468_p0 = scmp.ne.s32.totalorder %s1743_s29, %s1467_s27  ;;  %s1472_s19 = sshll.u32 %s1561_s12, 4  ;;  %s1473_s19 = int_to_ptr.vmem [resolvable:$false] %s1472_s19 }
  0x50   : > { %s1474_s15 = scalar_lea.vmem %s1473_s19, 512  ;;  %p1475_p10 = scmp.lt.s32.totalorder %s1743_s29, %s1473_s19 }
  0x51   : > { %p1470_p6 = pnand %p1468_p0, %p1456_p5  ;;  %p1476_p3 = scmp.lt.s32.totalorder %s1474_s15, %s1467_s27 }
  0x53   : > { %p1471_p2 = pneg %p1470_p6  ;;  %p1477_p4 = por %p1476_p3, %p1475_p10 }
  0x55   : > { %p1478_p8 = pnand %p1477_p4, %p1471_p2 }
  0x57   : > { %1481 = shalt.err (!%p1478_p8)
}
  0x58   : > { %s1920_s9 = smov 4   ;;  %s1921_s22 = smov 64  }
  0x59   : > { %1282 = dma.hbm_to_vmem [thread:$0]  (!%p1739_p11), %s1737_s16, 256, %s1743_s29, %s1745_s5, %s1921_s22, %s1921_s22, %s1920_s9  }
  0x5a   : > { %p1922_p6 = scmp.ne.s32.totalorder %s1912_s25, 0 }
  0x5b   : > { %s1772_s12 = sand.u32 (!%p1922_p6), 1, %s1546_s18   ;;  %p1923_p4 = scmp.ne.s32.totalorder (!%p1922_p6), %s1910_s23, 0 }
  0x5c   : > { %392 = sbr.rel (%p1922_p6) target bundleno = 1385 (0x569), region = 64  ;;  %s1118_s19 = sshll.u32 (!%p1922_p6), %s1772_s12, 4 }
  0x5d   : > { %s395_s13 = scalar_lea.sflag (!%p1922_p6), [#allocation3], %s1772_s12  ;;  %s1776_s26 = scalar_lea.vmem (!%p1922_p6), [#allocation2], %s1118_s19 }
  0x61   : > { %1525 = dma.done.wait (%p1923_p4), %s395_s13, 256  }
  0x62   : > { %1527 = vsyncadd (%p1923_p4), %s395_s13, 4294967040  ;;  %p1924_p8 = scmp.eq.s32.totalorder %s1646_s21, 0 }
  0x64   : > { %1529 = dma.done.wait (%p1924_p8), [#allocation6], 2048   ;;  %p1925_p3 = pmov %p1924_p8 }
  0x66   : > { %1531 = vsyncadd (%p1925_p3), [#allocation6], 4294965248  ;;  %p1926_p11 = pmov %p1925_p3 }
  0x67   : > { %p1927_p5 = pmov %p1925_p3 }
  0x68   : > { %1533 = dma.done.wait (%p1926_p11), [#allocation9], 1024  }
  0x69   : > { %1535 = vsyncadd (%p1927_p5), [#allocation9], 4294966272  ;;  %v1334_v0 = vld [vmem:[#allocation5 + $0x38] sm:$0xff]   ;;  %v1335_v1 = vld [vmem:[#allocation5 + $0x30] sm:$0xff]   ;;  %v608_v23 = vlaneseq  ;;  %s1122_s13 = sshll.u32 %s1772_s12, 5  ;;  %s1162_s25 = sshll.u32 %s1646_s21, 9 }
  0x6a   : > { %1193 = vmatprep.subr.bf16.mxu0 %v1334_v0  ;;  %v1336_v2 = vld [vmem:[#allocation5 + $0x28] sm:$0xff]   ;;  %v1337_v3 = vld [vmem:[#allocation5 + $0x20] sm:$0xff]   ;;  %v1338_v5 = vld [vmem:[#allocation5 + $0x18] sm:$0xff]   ;;  %s448_s5 = scalar_lea.vmem [#allocation10], %s1122_s13  ;;  %s1844_s28 = scalar_lea.hbm %s1898_s11, %s1162_s25 }
  0x6b   : > { %1194 = vmatpush3.bf16.msra.mxu0 %v1334_v0  ;;  %v1342_v4 = vld [vmem:[%s1776_s26] sm:$0xff]   ;;  %v1340_v7 = vld [vmem:[#allocation5 + $0x8] sm:$0xff]   ;;  %v1795_v27 = vand.u32 127, %v608_v23  ;;  %v1344_v45 = vld [vmem:[#allocation7 + $0x38] sm:$0xff]   ;;  %s1006_s23 = sshll.u32 %s448_s5, 4  ;;  %s993_s27 = scalar_lea.sflag [#allocation4], %s1772_s12  ;;  %s1839_s23 = int_to_ptr.vmem [resolvable:$true] %s1006_s23 }
  0x6c   : > { %1195 = vmatprep.subr.bf16.mxu0 %v1335_v1  ;;  %1209 = vmatprep.mubr.bf16.mxu0 %v1342_v4  ;;  %v1339_v6 = vld [vmem:[#allocation5 + $0x10] sm:$0xff]   ;;  %v1341_v8 = vld [vmem:[#allocation5] sm:$0xff]   ;;  %v1343_v9 = vld [vmem:[%s1776_s26 + $0x8] sm:$0xff]   ;;  %s1482_s15 = scalar_lea.vmem %s1839_s23, 512  ;;  %p1928_p1 = scmp.ne.s32.totalorder %s1918_s14, 0 }
  0x6d   : > { %v1123_v10 = vld [vmem:[%s1889_s2] ss:$0 sm:$0xff]  ;;  %vm610_vm0 = vcmp.lt.s32.totalorder %v1795_v27, 32  ;;  %1213 = vmatprep.subr.bf16.mxu1 %v1344_v45  ;;  %v1345_v46 = vld [vmem:[#allocation7 + $0x30] sm:$0xff]   ;;  %v1346_v47 = vld [vmem:[#allocation7 + $0x28] sm:$0xff]   ;;  %vm809_vm1 = vcmp.lt.s32.totalorder %v1795_v27, 48  ;;  %p1483_p7 = scmp.ne.s32.totalorder %s1839_s23, %s1482_s15 }
  0x6e   : > { %1214 = vmatpush3.bf16.msra.mxu1 %v1344_v45  ;;  %v1347_v48 = vld [vmem:[#allocation7 + $0x20] sm:$0xff]   ;;  %v1348_v49 = vld [vmem:[#allocation7 + $0x18] sm:$0xff]   ;;  %v1349_v50 = vld [vmem:[#allocation7 + $0x10] sm:$0xff]   ;;  %s1562_s21 = smov [#allocation10]  }
  0x6f   : > { %1196 = vmatpush3.bf16.msra.mxu0 %v1335_v1  ;;  %1215 = vmatprep.subr.bf16.mxu1 %v1345_v46  ;;  %v1350_v51 = vld [vmem:[#allocation7 + $0x8] sm:$0xff]   ;;  %v1351_v52 = vld [vmem:[#allocation7] sm:$0xff]   ;;  %p1484_p12 = pnand %p1483_p7, %p1928_p1  ;;  %s1486_s9 = sshll.u32 %s1562_s21, 4  ;;  %s1487_s9 = int_to_ptr.vmem [resolvable:$false] %s1486_s9 }
  0x70   : > { %1197 = vmatprep.subr.bf16.mxu0 %v1336_v2  ;;  %v1358_v27 = vld [vmem:[#allocation8 + $0x8] sm:$0xff]   ;;  %s1488_s22 = scalar_lea.vmem %s1487_s9, 1024  ;;  %p1489_p13 = scmp.lt.s32.totalorder %s1839_s23, %s1487_s9 }
  0x71   : > { %p1485_p9 = pneg %p1484_p12  ;;  %p1490_p0 = scmp.lt.s32.totalorder %s1488_s22, %s1482_s15 }
  0x72   : > { %1216 = vmatpush3.bf16.msra.mxu1 %v1345_v46 }
  0x73   : > { %1198 = vmatpush3.bf16.msra.mxu0 %v1336_v2  ;;  %1217 = vmatprep.subr.bf16.mxu1 %v1346_v47  ;;  %p1491_p2 = por %p1490_p0, %p1489_p13 }
  0x74   : > { %1199 = vmatprep.subr.bf16.mxu0 %v1337_v3 }
  0x75   : > { %p1492_p10 = pnand %p1491_p2, %p1485_p9 }
  0x76   : > { %1218 = vmatpush3.bf16.msra.mxu1 %v1346_v47 }
  0x77   : > { %1200 = vmatpush3.bf16.msra.mxu0 %v1337_v3  ;;  %1219 = vmatprep.subr.bf16.mxu1 %v1347_v48  ;;  %v1134_v3 = vld [vmem:[%s1890_s3] ss:$0 sm:$0xff] }
  0x78   : > { %1201 = vmatprep.subr.bf16.mxu0 %v1338_v5 }
  0x7a   : > { %1220 = vmatpush3.bf16.msra.mxu1 %v1347_v48 }
  0x7b   : > { %1202 = vmatpush3.bf16.msra.mxu0 %v1338_v5  ;;  %1221 = vmatprep.subr.bf16.mxu1 %v1348_v49 }
  0x7c   : > { %1203 = vmatprep.subr.bf16.mxu0 %v1339_v6 }
  0x7e   : > { %1222 = vmatpush3.bf16.msra.mxu1 %v1348_v49 }
  0x7f   : > { %1204 = vmatpush3.bf16.msra.mxu0 %v1339_v6  ;;  %1223 = vmatprep.subr.bf16.mxu1 %v1349_v50 }
  0x80   : > { %1205 = vmatprep.subr.bf16.mxu0 %v1340_v7 }
  0x82   : > { %1224 = vmatpush3.bf16.msra.mxu1 %v1349_v50 }
  0x83   : > { %1206 = vmatpush3.bf16.msra.mxu0 %v1340_v7  ;;  %1225 = vmatprep.subr.bf16.mxu1 %v1350_v51 }
  0x84   : > { %1207 = vmatprep.subr.bf16.mxu0 %v1341_v8 }
  0x86   : > { %1226 = vmatpush3.bf16.msra.mxu1 %v1350_v51 }
  0x87   : > { %1208 = vmatpush3.bf16.msra.mxu0 %v1341_v8  ;;  %1227 = vmatprep.subr.bf16.mxu1 %v1351_v52  ;;  %v1135_v8 = vld [vmem:[%s1891_s4] ss:$0 sm:$0xff] }
  0x8a   : > { %1210 = vmatmul.mubr.bf16.vlgmr.msra.gmra.mxu0 %v1343_v9  ;;  %1228 = vmatpush3.bf16.msra.mxu1 %v1351_v52 }
 0x14a   : > { %v1211_v11 = vpop.f32.mrf.mxu0 }
 0x14b   : > { %v582_v12 = vadd.f32 %v1211_v11, %v1123_v10 }
 0x14c   : > { %v573_v13 = vpop.f32.mrf.mxu0 }
 0x14d   : > { %v590_v14 = vmax.f32 %v582_v12, 0.0  ;;  %v574_v15 = vadd.f32 %v1123_v10, %v573_v13 }
 0x14e   : > { %v1212_v16 = vpop.f32.mrf.mxu0 }
 0x14f   : > { %v588_v17 = vmax.f32 %v574_v15, 0.0  ;;  %v585_v18 = vadd.f32 %v1212_v16, %v1123_v10  ;;  %596 = vadd.xlane.f32.xlu1 %v590_v14 }
 0x150   : > { %v576_v19 = vpop.f32.mrf.mxu0 }
 0x151   : > { %v591_v20 = vmax.f32 %v585_v18, 0.0  ;;  %v577_v21 = vadd.f32 %v1123_v10, %v576_v19  ;;  %592 = vadd.xlane.f32.xlu0 %v588_v17 }
 0x153   : > { %v589_v22 = vmax.f32 %v577_v21, 0.0  ;;  %598 = vadd.xlane.f32.xlu1 %v591_v20 }
 0x155   : > { %594 = vadd.xlane.f32.xlu0 %v589_v22 }
 0x1d8   : > { %v597_v24 = vpop.xlane.xlu1 %596 }
 0x1d9   : > { %v602_v25 = vmul.f32 0.03125, %v597_v24 }
 0x1da   : > { %v593_v26 = vpop.xlane.xlu0 %592 }
 0x1db   : > { %v600_v28 = vmul.f32 0.03125, %v593_v26  ;;  %v1797_v30 = vsub.f32 %v590_v14, %v602_v25 }
 0x1dc   : > { %v599_v29 = vpop.xlane.xlu1 %598 }
 0x1dd   : > { %v604_v31 = vsub.f32 %v588_v17, %v600_v28  ;;  %v603_v32 = vmul.f32 0.03125, %v599_v29  ;;  %v615_v39 = vsel %vm610_vm0, %v1797_v30, 0.0 }
 0x1de   : > { %v595_v33 = vpop.xlane.xlu0 %594  ;;  %v619_v41 = vmul.f32 %v615_v39, %v615_v39 }
 0x1df   : > { %v601_v34 = vmul.f32 0.03125, %v595_v33  ;;  %v613_v35 = vsel %vm610_vm0, %v604_v31, 0.0  ;;  %v1800_v37 = vsub.f32 %v591_v20, %v603_v32 }
 0x1e0   : > { %v617_v36 = vmul.f32 %v613_v35, %v613_v35 }
 0x1e1   : > { %v605_v38 = vsub.f32 %v589_v22, %v601_v34  ;;  %v616_v43 = vsel %vm610_vm0, %v1800_v37, 0.0  ;;  %v1136_v22 = vld [vmem:[%s1893_s6] ss:$0 sm:$0xff] }
 0x1e2   : > { %621 = vadd.xlane.f32.xlu0 %v617_v36  ;;  %v620_v44 = vmul.f32 %v616_v43, %v616_v43 }
 0x1e3   : > { %v614_v40 = vsel %vm610_vm0, %v605_v38, 0.0 }
 0x1e4   : > { %v618_v42 = vmul.f32 %v614_v40, %v614_v40 }
 0x1e6   : > { %625 = vadd.xlane.f32.xlu0 %v619_v41  ;;  %623 = vadd.xlane.f32.xlu1 %v618_v42 }
 0x1ea   : > { %627 = vadd.xlane.f32.xlu1 %v620_v44 }
 0x26b   : > { %v622_v53 = vpop.xlane.xlu0 %621 }
 0x26c   : > { %v629_v54 = vmul.f32 0.03125, %v622_v53 }
 0x26e   : > { %v633_v55 = vadd.f32 1e-05, %v629_v54 }
 0x26f   : > { %v624_v56 = vpop.xlane.xlu1 %623  ;;  %v626_v57 = vpop.xlane.xlu0 %625 }
 0x270   : > { %1360 = vrsqrt.f32 %v633_v55  ;;  %v630_v58 = vmul.f32 0.03125, %v624_v56  ;;  %v631_v59 = vmul.f32 0.03125, %v626_v57  ;;  %v1352_v55 = vld [vmem:[#allocation8 + $0x38] sm:$0xff]   ;;  %v1353_v56 = vld [vmem:[#allocation8 + $0x30] sm:$0xff]   ;;  %v1354_v57 = vld [vmem:[#allocation8 + $0x28] sm:$0xff]  }
 0x271   : > { %1233 = vmatprep.subr.bf16.mxu0 %v1352_v55 }
 0x272   : > { %v634_v60 = vadd.f32 1e-05, %v630_v58  ;;  %v635_v61 = vadd.f32 1e-05, %v631_v59  ;;  %1234 = vmatpush3.bf16.msra.mxu0 %v1352_v55  ;;  %v1355_v58 = vld [vmem:[#allocation8 + $0x20] sm:$0xff]   ;;  %v1356_v59 = vld [vmem:[#allocation8 + $0x18] sm:$0xff]  }
 0x273   : > { %v628_v62 = vpop.xlane.xlu1 %627  ;;  %1235 = vmatprep.subr.bf16.mxu0 %v1353_v56 }
 0x274   : > { %1362 = vrsqrt.f32 %v634_v60  ;;  %v632_v63 = vmul.f32 0.03125, %v628_v62  ;;  %v1357_v60 = vld [vmem:[#allocation8 + $0x10] sm:$0xff]  }
 0x275   : > { %1364 = vrsqrt.f32 %v635_v61  ;;  %v1359_v61 = vld [vmem:[#allocation8] sm:$0xff]  }
 0x276   : > { %v636_v0 = vadd.f32 1e-05, %v632_v63  ;;  %1236 = vmatpush3.bf16.msra.mxu0 %v1353_v56 }
 0x277   : > { %1237 = vmatprep.subr.bf16.mxu0 %v1354_v57 }
 0x278   : > { %1366 = vrsqrt.f32 %v636_v0 }
 0x27a   : > { %1238 = vmatpush3.bf16.msra.mxu0 %v1354_v57 }
 0x27b   : > { %1239 = vmatprep.subr.bf16.mxu0 %v1355_v58 }
 0x27d   : > { %v1361_v1 = vpop.eup %1360 }
 0x27e   : > { %v641_v2 = vmul.f32 %v1361_v1, %v604_v31  ;;  %1240 = vmatpush3.bf16.msra.mxu0 %v1355_v58 }
 0x27f   : > { %1241 = vmatprep.subr.bf16.mxu0 %v1356_v59 }
 0x280   : > { %v652_v7 = vmul.f32 %v1134_v3, %v641_v2 }
 0x281   : > { %v1363_v4 = vpop.eup %1362 }
 0x282   : > { %v1365_v5 = vpop.eup %1364  ;;  %v642_v6 = vmul.f32 %v1363_v4, %v605_v38  ;;  %v663_v12 = vadd.f32 %v1135_v8, %v652_v7  ;;  %1242 = vmatpush3.bf16.msra.mxu0 %v1356_v59 }
 0x283   : > { %v643_v9 = vmul.f32 %v1365_v5, %v1797_v30  ;;  %1243 = vmatprep.subr.bf16.mxu0 %v1357_v60 }
 0x284   : > { %v653_v10 = vmul.f32 %v1134_v3, %v642_v6 }
 0x285   : > { %v1367_v11 = vpop.eup %1366  ;;  %v654_v15 = vmul.f32 %v1134_v3, %v643_v9 }
 0x286   : > { %v664_v13 = vadd.f32 %v1135_v8, %v653_v10  ;;  %v644_v14 = vmul.f32 %v1367_v11, %v1800_v37  ;;  %1244 = vmatpush3.bf16.msra.mxu0 %v1357_v60 }
 0x287   : > { %v665_v18 = vadd.f32 %v1135_v8, %v654_v15  ;;  %1245 = vmatprep.subr.bf16.mxu0 %v1358_v27 }
 0x288   : > { %v667_v16 = vpack.c.bf16 %v664_v13, %v663_v12  ;;  %v655_v17 = vmul.f32 %v1134_v3, %v644_v14  ;;  %v1145_v12 = vld [vmem:[%s1894_s7] ss:$0 sm:$0xff] }
 0x28a   : > { %1229 = vmatprep.mubr.bf16.mxu1 %v667_v16  ;;  %v666_v19 = vadd.f32 %v1135_v8, %v655_v17  ;;  %1246 = vmatpush3.bf16.msra.mxu0 %v1358_v27  ;;  %v1146_v17 = vld [vmem:[%s1895_s8] ss:$0 sm:$0xff] }
 0x28b   : > { %1247 = vmatprep.subr.bf16.mxu0 %v1359_v61 }
 0x28c   : > { %v668_v20 = vpack.c.bf16 %v666_v19, %v665_v18 }
 0x28e   : > { %1230 = vmatmul.mubr.bf16.vlgmr.msra.gmra.mxu1 %v668_v20  ;;  %1248 = vmatpush3.bf16.msra.mxu0 %v1359_v61 }
 0x34e   : > { %v1231_v21 = vpop.f32.mrf.mxu1 }
 0x34f   : > { %v783_v26 = vadd.f32 %v1231_v21, %v1136_v22 }
 0x350   : > { %v774_v23 = vpop.f32.mrf.mxu1 }
 0x351   : > { %v775_v24 = vadd.f32 %v1136_v22, %v774_v23  ;;  %v791_v31 = vmax.f32 %v783_v26, 0.0 }
 0x352   : > { %v1232_v25 = vpop.f32.mrf.mxu1 }
 0x353   : > { %v789_v28 = vmax.f32 %v775_v24, 0.0  ;;  %v786_v32 = vadd.f32 %v1232_v25, %v1136_v22 }
 0x354   : > { %v777_v29 = vpop.f32.mrf.mxu1 }
 0x355   : > { %v778_v30 = vadd.f32 %v1136_v22, %v777_v29  ;;  %793 = vadd.xlane.f32.xlu0 %v789_v28  ;;  %v792_v34 = vmax.f32 %v786_v32, 0.0 }
 0x357   : > { %v790_v33 = vmax.f32 %v778_v30, 0.0 }
 0x359   : > { %795 = vadd.xlane.f32.xlu1 %v790_v33  ;;  %797 = vadd.xlane.f32.xlu0 %v791_v31 }
 0x35d   : > { %799 = vadd.xlane.f32.xlu1 %v792_v34 }
 0x3de   : > { %v794_v35 = vpop.xlane.xlu0 %793 }
 0x3df   : > { %v801_v36 = vmul.f32 0.020833334, %v794_v35 }
 0x3e1   : > { %v1816_v37 = vsub.f32 %v789_v28, %v801_v36 }
 0x3e2   : > { %v796_v38 = vpop.xlane.xlu1 %795  ;;  %v798_v39 = vpop.xlane.xlu0 %797 }
 0x3e3   : > { %v802_v40 = vmul.f32 0.020833334, %v796_v38  ;;  %v803_v41 = vmul.f32 0.020833334, %v798_v39  ;;  %v812_v42 = vsel %vm809_vm1, %v1816_v37, 0.0 }
 0x3e4   : > { %v816_v43 = vmul.f32 %v812_v42, %v812_v42 }
 0x3e5   : > { %v806_v44 = vsub.f32 %v790_v33, %v802_v40  ;;  %v807_v45 = vsub.f32 %v791_v31, %v803_v41  ;;  %v1147_v31 = vld [vmem:[%s1897_s10] ss:$0 sm:$0xff] }
 0x3e6   : > { %v800_v46 = vpop.xlane.xlu1 %799  ;;  %820 = vadd.xlane.f32.xlu0 %v816_v43 }
 0x3e7   : > { %v804_v47 = vmul.f32 0.020833334, %v800_v46  ;;  %v813_v48 = vsel %vm809_vm1, %v806_v44, 0.0  ;;  %v814_v49 = vsel %vm809_vm1, %v807_v45, 0.0 }
 0x3e8   : > { %v817_v50 = vmul.f32 %v813_v48, %v813_v48  ;;  %v818_v51 = vmul.f32 %v814_v49, %v814_v49 }
 0x3e9   : > { %v808_v52 = vsub.f32 %v792_v34, %v804_v47 }
 0x3ea   : > { %822 = vadd.xlane.f32.xlu1 %v817_v50  ;;  %824 = vadd.xlane.f32.xlu0 %v818_v51 }
 0x3eb   : > { %v815_v53 = vsel %vm809_vm1, %v808_v52, 0.0 }
 0x3ec   : > { %v819_v54 = vmul.f32 %v815_v53, %v815_v53 }
 0x3ee   : > { %826 = vadd.xlane.f32.xlu1 %v819_v54 }
 0x46f   : > { %v821_v62 = vpop.xlane.xlu0 %820 }
 0x470   : > { %v828_v63 = vmul.f32 0.020833334, %v821_v62 }
 0x472   : > { %v832_v0 = vadd.f32 1e-05, %v828_v63 }
 0x473   : > { %v823_v1 = vpop.xlane.xlu1 %822  ;;  %v825_v2 = vpop.xlane.xlu0 %824 }
 0x474   : > { %1368 = vrsqrt.f32 %v832_v0  ;;  %v829_v3 = vmul.f32 0.020833334, %v823_v1  ;;  %v830_v4 = vmul.f32 0.020833334, %v825_v2 }
 0x476   : > { %v833_v5 = vadd.f32 1e-05, %v829_v3  ;;  %v834_v6 = vadd.f32 1e-05, %v830_v4 }
 0x477   : > { %v827_v7 = vpop.xlane.xlu1 %826 }
 0x478   : > { %1370 = vrsqrt.f32 %v833_v5  ;;  %v831_v8 = vmul.f32 0.020833334, %v827_v7 }
 0x479   : > { %1372 = vrsqrt.f32 %v834_v6 }
 0x47a   : > { %v835_v9 = vadd.f32 1e-05, %v831_v8 }
 0x47c   : > { %1374 = vrsqrt.f32 %v835_v9 }
 0x481   : > { %v1369_v10 = vpop.eup %1368 }
 0x482   : > { %v840_v11 = vmul.f32 %v1369_v10, %v1816_v37 }
 0x484   : > { %v851_v16 = vmul.f32 %v1145_v12, %v840_v11 }
 0x485   : > { %v1371_v13 = vpop.eup %1370 }
 0x486   : > { %v1373_v14 = vpop.eup %1372  ;;  %v841_v15 = vmul.f32 %v1371_v13, %v806_v44  ;;  %v862_v21 = vadd.f32 %v1146_v17, %v851_v16 }
 0x487   : > { %v842_v18 = vmul.f32 %v1373_v14, %v807_v45 }
 0x488   : > { %v852_v19 = vmul.f32 %v1145_v12, %v841_v15 }
 0x489   : > { %v1375_v20 = vpop.eup %1374  ;;  %v853_v24 = vmul.f32 %v1145_v12, %v842_v18 }
 0x48a   : > { %v863_v22 = vadd.f32 %v1146_v17, %v852_v19  ;;  %v843_v23 = vmul.f32 %v1375_v20, %v808_v52 }
 0x48b   : > { %v864_v28 = vadd.f32 %v1146_v17, %v853_v24 }
 0x48c   : > { %v866_v25 = vpack.c.bf16 %v863_v22, %v862_v21  ;;  %v854_v26 = vmul.f32 %v1145_v12, %v843_v23 }
 0x48e   : > { %1249 = vmatprep.mubr.bf16.mxu0 %v866_v25  ;;  %v865_v29 = vadd.f32 %v1146_v17, %v854_v26 }
 0x490   : > { %v867_v30 = vpack.c.bf16 %v865_v29, %v864_v28 }
 0x492   : > { %1250 = vmatmul.mubr.bf16.vlgmr.msra.gmra.mxu0 %v867_v30 }
 0x552   : > { %v1251_v32 = vpop.f32.mrf.mxu0 }
 0x553   : > { %v982_v33 = vadd.f32 %v1251_v32, %v1147_v31 }
 0x554   : > { %v973_v34 = vpop.f32.mrf.mxu0 }
 0x555   : > { %990 = vst [vmem:[%s448_s5 + $0x10] sm:$0xff] %v982_v33  ;;  %v974_v35 = vadd.f32 %v1147_v31, %v973_v34 }
 0x556   : > { %v1252_v36 = vpop.f32.mrf.mxu0 }
 0x557   : > { %988 = vst [vmem:[%s448_s5] sm:$0xff] %v974_v35  ;;  %v985_v37 = vadd.f32 %v1252_v36, %v1147_v31 }
 0x558   : > { %v976_v38 = vpop.f32.mrf.mxu0 }
 0x559   : > { %991 = vst [vmem:[%s448_s5 + $0x18] sm:$0xff] %v985_v37  ;;  %v977_v39 = vadd.f32 %v1147_v31, %v976_v38 }
 0x55b   : > { %989 = vst [vmem:[%s448_s5 + $0x8] sm:$0xff] %v977_v39 }
 0x55c   : > { %1495 = shalt.err (!%p1492_p10)
}
 0x55d   : > { %s1496_s19 = scalar_lea.hbm %s1844_s28, 512  ;;  %s1500_s1 = scalar_lea.hbm %s1898_s11, 1024 }
 0x55e   : > { %p1497_p6 = scmp.ne.s32.totalorder %s1844_s28, %s1496_s19  ;;  %p1501_p3 = scmp.lt.s32.totalorder %s1844_s28, %s1898_s11 }
 0x55f   : > { %p1502_p11 = scmp.lt.s32.totalorder %s1500_s1, %s1496_s19 }
 0x560   : > { %p1498_p4 = pnand %p1497_p6, %p1928_p1 }
 0x561   : > { %p1503_p5 = por %p1502_p11, %p1501_p3 }
 0x562   : > { %p1499_p8 = pneg %p1498_p4 }
 0x564   : > { %p1504_p7 = pnand %p1503_p5, %p1499_p8 }
 0x566   : > { %1507 = shalt.err (!%p1504_p7)
}
 0x567   : > { %s1563_s16 = smov 128   ;;  %s1564_s29 = smov 8  }
 0x568   : > { %1267 = dma.vmem_to_hbm [thread:$0]  (%p1928_p1), %s1839_s23, 512, %s1844_s28, %s993_s27, %s1563_s16, %s1563_s16, %s1564_s29  }
 0x569 PF: > { %s1021_s15 = sand.u32 1, %s1542_s17   ;;  %p1929_p12 = scmp.ne.s32.totalorder %s1911_s24, 0 }
 0x56a   : > { %p1930_p9 = scmp.ge.s32.totalorder %s1554_s20, 2  ;;  %s1022_s21 = scalar_lea.sflag [#allocation4], %s1021_s15 }
 0x56c   : > { %p1284_p13 = pnand %p1930_p9, %p1929_p12 }
 0x56e   : > { %p1285_p0 = pneg %p1284_p13 }
 0x570   : > { %1537 = dma.done.wait (%p1285_p0), %s1022_s21, 512  }
 0x571   : > { %1539 = vsyncadd (%p1285_p0), %s1022_s21, 4294966784  ;;  %s1931_s9 = sld [smem:[#allocation15_spill]]  ;;  %p26_p2 = scmp.ge.s32.totalorder %s1714_s30, 4  }
 0x572   : > { %s1932_s19 = sld [smem:[#allocation16_spill]]  ;;  %s1933_s17 = smov %s1546_s18 }
 0x573   : > { %s1935_s20 = smov %s1714_s30  ;;  %28 = sbr.rel (!%p26_p2) target bundleno = 11 (0xb), region = 121 }
 0x577   : > { %s1934_s18 = smov %s1931_s9 }
 0x578   :  { %1027 = vsyncpa [#allocation3], 1 }
 0x579   :  { %1029 = vsyncpa [#allocation3 + $0x1], 1 }
 0x57a   :  { %1030 = vsyncpa [#allocation6], 1 }
 0x57b   :  { %1031 = vsyncpa [#allocation9], 1 }
 0x57c   :  { %1032 = vsyncpa [#allocation4], 1 }
 0x57d   :  { %1034 = vsyncpa [#allocation4 + $0x1], 1 }

</bundles_post_ra>
